<compile_context>
chip_gen: v7x
topology: tpu7x:2x2x1
jax: 0.10.0
libtpu: 0.0.40
codegen_flags: <defaults>
</compile_context>

<pallas_src>
import functools

import jax
import jax.numpy as jnp
from jax.experimental import pallas as pl
from jax.experimental.pallas import tpu as pltpu


# ----------------------------------------------------------------------------
# Small helpers
# ----------------------------------------------------------------------------
def _layer_norm(x, w, b, eps=1e-5):
    # x: (N, D) f32; w, b: (1, D) f32.
    m = jnp.mean(x, axis=-1, keepdims=True)
    v = jnp.mean(jnp.square(x - m), axis=-1, keepdims=True)
    return (x - m) * jax.lax.rsqrt(v + eps) * w + b


def _vmem_limit_bytes():
    """~3/4 of physical VMEM: 96 MiB on v5e/v6e (128 MiB), 48 MiB on v7x (64 MiB)."""
    try:
        cap = int(pltpu.get_tpu_info().vmem_capacity_bytes)
    except Exception:
        cap = 64 * 1024 * 1024
    return max(32 * 1024 * 1024, (cap * 3) // 4)


def _weight_bytes(D):
    mm = (D * 3 * D + D * D + D * 4 * D + 4 * D * D) * 2      # bf16 matmul weights
    vec = (3 * D + D + 4 * D + D + 4 * D) * 4                 # f32 biases + LN params
    return mm + vec


def _act_bytes_per_tile(tb, S, D, H):
    """Generous estimate of in-kernel temporaries for one (tb, S, D) tile."""
    N = tb * S
    per_token = (6 * D * 4          # x, h1/h2, attn, residuals, staging (f32)
                 + 2 * 3 * D * 2    # qkv bf16 (+ head-reordered copies)
                 + 4 * D * 4        # MLP hidden f32 accumulate
                 + 4 * D * 2        # MLP hidden bf16
                 + 2 * H * S * 4)   # scores + exp(scores) f32
    return N * per_token


def choose_batch_tile(B, S, D, H, *, single_buffer_weights=False, vmem_limit=None):
    """Largest divisor of B that fits the VMEM budget; prefer >=2 grid steps."""
    if vmem_limit is None:
        vmem_limit = _vmem_limit_bytes()
    wfac = 1 if single_buffer_weights else 2
    budget = vmem_limit - wfac * _weight_bytes(D) - 2 * 1024 * 1024

    def fits(tb):
        io = 4 * tb * S * D * 4            # double-buffered in + out x tiles (f32)
        return io + _act_bytes_per_tile(tb, S, D, H) <= budget

    divisors = [d for d in range(1, B + 1) if B % d == 0]
    cands = [d for d in divisors if fits(d)]
    if not cands:
        return 1
    if B > 1:
        proper = [d for d in cands if d < B]   # keep the grid >= 2 steps
        if proper:
            return max(proper)
    return max(cands)


def _cost_estimate(B, S, D, H):
    N = B * S
    flops = 2 * N * D * (3 * D + D + 4 * D + 4 * D) + 4 * B * S * S * D
    transcendentals = B * H * S * S + N * 4 * D        # softmax exp + GELU sigmoid
    bytes_accessed = _weight_bytes(D) + 2 * N * D * 4
    return pl.CostEstimate(flops=flops, transcendentals=transcendentals,
                           bytes_accessed=bytes_accessed)


# ----------------------------------------------------------------------------
# Head split / merge candidates (probed once; fallback = per-head loop)
# ----------------------------------------------------------------------------
def _split_heads_einshape(t2, TB, S, H, Dh):
    # (TB*S, H*Dh) -> (TB*H, S, Dh)
    return pltpu.einshape("(bs)(hd)->(bh)sd", t2, b=TB, s=S, h=H, d=Dh)


def _merge_heads_einshape(t3, TB, S, H, Dh):
    # (TB*H, S, Dh) -> (TB*S, H*Dh)
    return pltpu.einshape("(bh)sd->(bs)(hd)", t3, b=TB, h=H)


def _split_heads_transpose(t2, TB, S, H, Dh):
    t4 = t2.reshape(TB, S, H, Dh)
    return jnp.transpose(t4, (0, 2, 1, 3)).reshape(TB * H, S, Dh)


def _merge_heads_transpose(t3, TB, S, H, Dh):
    t4 = t3.reshape(TB, H, S, Dh)
    return jnp.transpose(t4, (0, 2, 1, 3)).reshape(TB * S, H * Dh)


_HEAD_IMPL_CANDIDATES = (
    ("einshape", _split_heads_einshape, _merge_heads_einshape),
    ("transpose", _split_heads_transpose, _merge_heads_transpose),
)
_HEAD_IMPL_CACHE = {}          # (tb, S, D, H) -> (split_fn|None, merge_fn|None)
_SINGLE_BUFFER_OK = None       # whether pipeline_mode=pl.Buffered(1) lowers


def select_head_impl(tb, S, D, H):
    """Pick a fused (single batched einsum) head split/merge implementation if
    Mosaic lowers it at these shapes; else fall back to the per-head loop.
    Must be called OUTSIDE jit (runs tiny probe kernels eagerly)."""
    key = (tb, S, D, H)
    if key in _HEAD_IMPL_CACHE:
        return _HEAD_IMPL_CACHE[key]
    Dh = D // H
    x = jax.random.normal(jax.random.PRNGKey(0), (tb, S, D), jnp.float32)
    xb = x.reshape(tb * S, D).astype(jnp.bfloat16)
    want_split = jnp.transpose(xb.reshape(tb, S, H, Dh), (0, 2, 1, 3)).reshape(tb * H, S, Dh)
    want_rt = jnp.transpose(want_split.astype(jnp.float32).reshape(tb, H, S, Dh),
                            (0, 2, 1, 3)).reshape(tb, S, D)

    chosen = (None, None)
    for _name, split_fn, merge_fn in _HEAD_IMPL_CANDIDATES:
        def probe_kernel(x_ref, sp_ref, rt_ref, _split=split_fn, _merge=merge_fn):
            xv = x_ref[...]
            x2 = xv.reshape(tb * S, D).astype(jnp.bfloat16)
            sp = _split(x2, tb, S, H, Dh)                  # bf16, like the real kernel
            sp_ref[...] = sp
            rt = _merge(sp.astype(jnp.float32), tb, S, H, Dh)   # f32, like the real kernel
            rt_ref[...] = rt.reshape(tb, S, D)
        try:
            sp, rt = pl.pallas_call(
                probe_kernel,
                out_shape=(jax.ShapeDtypeStruct((tb * H, S, Dh), jnp.bfloat16),
                           jax.ShapeDtypeStruct((tb, S, D), jnp.float32)),
            )(x)
            sp, rt = jax.block_until_ready((sp, rt))
            if bool(jnp.array_equal(sp, want_split)) and bool(jnp.array_equal(rt, want_rt)):
                chosen = (split_fn, merge_fn)
                break
        except Exception:
            continue
    _HEAD_IMPL_CACHE[key] = chosen
    return chosen


def _single_buffer_weights_ok():
    """Probe whether BlockSpec(pipeline_mode=pl.Buffered(1)) is supported."""
    global _SINGLE_BUFFER_OK
    if _SINGLE_BUFFER_OK is not None:
        return _SINGLE_BUFFER_OK
    try:
        w = jnp.ones((8, 128), jnp.float32)
        xp = jnp.arange(16 * 128, dtype=jnp.float32).reshape(16, 128)

        def kb(x_ref, w_ref, o_ref):
            o_ref[...] = x_ref[...] + w_ref[...]

        out = pl.pallas_call(
            kb,
            grid=(2,),
            in_specs=[pl.BlockSpec((8, 128), lambda i: (i, 0)),
                      pl.BlockSpec((8, 128), lambda i: (0, 0),
                                   pipeline_mode=pl.Buffered(1))],
            out_specs=pl.BlockSpec((8, 128), lambda i: (i, 0)),
            out_shape=jax.ShapeDtypeStruct((16, 128), jnp.float32),
        )(xp, w)
        out = jax.block_until_ready(out)
        _SINGLE_BUFFER_OK = bool(jnp.allclose(out, xp + 1.0))
    except Exception:
        _SINGLE_BUFFER_OK = False
    return _SINGLE_BUFFER_OK


def warmup_transformer(B, S, D, H):
    """Run the capability probes (outside jit) and return the chosen batch tile."""
    single = _single_buffer_weights_ok()
    tb = choose_batch_tile(B, S, D, H, single_buffer_weights=single)
    select_head_impl(tb, S, D, H)
    return tb


# ----------------------------------------------------------------------------
# Fused residual-attention-block kernel
# ----------------------------------------------------------------------------
def resblock_kernel(x_ref,
                    ln1_w_ref, ln1_b_ref,
                    in_w_ref, in_b_ref,
                    out_w_ref, out_b_ref,
                    ln2_w_ref, ln2_b_ref,
                    fc_w_ref, fc_b_ref,
                    proj_w_ref, proj_b_ref,
                    o_ref, *, n_head, split_heads, merge_heads):
    """One ResidualAttentionBlock on a (TB, S, D) batch tile.

    Weight refs (pre-transposed so the kernel computes y = x @ W + b; the
    1/sqrt(Dh) query scale is already folded into in_w / in_b):
      in_w (D,3D) bf16   in_b (1,3D) f32    out_w (D,D) bf16   out_b (1,D) f32
      fc_w (D,4D) bf16   fc_b (1,4D) f32    proj_w (4D,D) bf16 proj_b (1,D) f32
      ln*_w / ln*_b: (1,D) f32
    """
    x3 = x_ref[...].astype(jnp.float32)          # (TB, S, D)
    TB, S, D = x3.shape
    H = n_head
    Dh = D // H
    N = TB * S

    x = x3.reshape(N, D)                         # token-major 2-D view (f32)

    # ---- attention branch: x + out_proj(MHA(ln_1(x))) ----
    h1 = _layer_norm(x, ln1_w_ref[...], ln1_b_ref[...])
    qkv = jnp.dot(h1.astype(jnp.bfloat16), in_w_ref[...],
                  preferred_element_type=jnp.float32) + in_b_ref[...]
    qkv = qkv.astype(jnp.bfloat16)               # (N, 3D) bf16; q-scale already folded
    q = qkv[:, :D]
    k = qkv[:, D:2 * D]
    v = qkv[:, 2 * D:]

    if split_heads is not None:
        # Heads folded into the batch dim: ONE batched einsum per matmul.
        qh = split_heads(q, TB, S, H, Dh)        # (TB*H, S, Dh) bf16
        kh = split_heads(k, TB, S, H, Dh)
        vh = split_heads(v, TB, S, H, Dh)
        s = jnp.einsum('bqd,bkd->bqk', qh, kh,
                       preferred_element_type=jnp.float32)          # (TB*H, S, S) f32
        s = s - jnp.max(s, axis=-1, keepdims=True)
        p = jnp.exp(s)
        denom = jnp.sum(p, axis=-1, keepdims=True)
        o = jnp.einsum('bqk,bkd->bqd', p.astype(jnp.bfloat16), vh,
                       preferred_element_type=jnp.float32)           # (TB*H, S, Dh) f32
        o = o * pl.reciprocal(denom, approx=True)                    # normalise AFTER AV
        attn = merge_heads(o, TB, S, H, Dh)                          # (N, D) f32
    else:
        # Fallback: per-head loop (used when the head relayout does not lower).
        q3 = q.reshape(TB, S, D)
        k3 = k.reshape(TB, S, D)
        v3 = v.reshape(TB, S, D)
        head_outs = []
        for h in range(H):
            lo = h * Dh
            s = jnp.einsum('bqd,bkd->bqk', q3[:, :, lo:lo + Dh], k3[:, :, lo:lo + Dh],
                           preferred_element_type=jnp.float32)
            s = s - jnp.max(s, axis=-1, keepdims=True)
            p = jnp.exp(s)
            denom = jnp.sum(p, axis=-1, keepdims=True)
            o_h = jnp.einsum('bqk,bkd->bqd', p.astype(jnp.bfloat16), v3[:, :, lo:lo + Dh],
                             preferred_element_type=jnp.float32)
            head_outs.append(o_h * pl.reciprocal(denom, approx=True))
        attn = jnp.concatenate(head_outs, axis=-1).reshape(N, D)

    attn_out = jnp.dot(attn.astype(jnp.bfloat16), out_w_ref[...],
                       preferred_element_type=jnp.float32) + out_b_ref[...]
    x = x + attn_out                                                 # f32 residual

    # ---- MLP branch: x + c_proj(QuickGELU(c_fc(ln_2(x)))) ----
    h2 = _layer_norm(x, ln2_w_ref[...], ln2_b_ref[...])
    hidden = jnp.dot(h2.astype(jnp.bfloat16), fc_w_ref[...],
                     preferred_element_type=jnp.float32) + fc_b_ref[...]   # (N, 4D) f32
    hidden = (hidden * jax.nn.sigmoid(1.702 * hidden)).astype(jnp.bfloat16)  # QuickGELU
    mlp_out = jnp.dot(hidden, proj_w_ref[...],
                      preferred_element_type=jnp.float32) + proj_b_ref[...]
    x = x + mlp_out                                                  # f32 residual

    o_ref[...] = x.reshape(TB, S, D).astype(o_ref.dtype)


def _weight_spec(shape, single_buffer):
    idx = lambda i, _n=len(shape): (0,) * _n
    if single_buffer:
        return pl.BlockSpec(shape, idx, pipeline_mode=pl.Buffered(1))
    return pl.BlockSpec(shape, idx)


def residual_attention_block(x_bsd, p, n_head, *, batch_block=None):
    """x_bsd: (B, S, D).  p: dict of per-layer parameters (pre-transposed)."""
    B, S, D = x_bsd.shape
    assert D % n_head == 0

    single_buf = bool(_SINGLE_BUFFER_OK)
    tb = batch_block if batch_block is not None else choose_batch_tile(
        B, S, D, n_head, single_buffer_weights=single_buf)
    assert B % tb == 0, "batch tile must divide the batch size"
    grid = (B // tb,)
    split_fn, merge_fn = _HEAD_IMPL_CACHE.get((tb, S, D, n_head), (None, None))

    x_spec = pl.BlockSpec((tb, S, D), lambda i: (i, 0, 0))
    wspec = lambda shape: _weight_spec(shape, single_buf)

    kernel = functools.partial(resblock_kernel, n_head=n_head,
                               split_heads=split_fn, merge_heads=merge_fn)
    return pl.pallas_call(
        kernel,
        out_shape=jax.ShapeDtypeStruct((B, S, D), x_bsd.dtype),
        grid=grid,
        in_specs=[
            x_spec,
            wspec((1, D)), wspec((1, D)),              # ln1 w/b
            wspec((D, 3 * D)), wspec((1, 3 * D)),      # in_proj w/b (q-scale folded)
            wspec((D, D)), wspec((1, D)),              # out_proj w/b
            wspec((1, D)), wspec((1, D)),              # ln2 w/b
            wspec((D, 4 * D)), wspec((1, 4 * D)),      # c_fc w/b
            wspec((4 * D, D)), wspec((1, D)),          # c_proj w/b
        ],
        out_specs=x_spec,
        input_output_aliases={0: 0},                   # x is fully overwritten
        cost_estimate=_cost_estimate(B, S, D, n_head),
        compiler_params=pltpu.CompilerParams(
            dimension_semantics=("parallel",),         # shard batch tiles across cores
            vmem_limit_bytes=_vmem_limit_bytes(),      # per-generation budget
        ),
    )(x_bsd,
      p['ln1_w'], p['ln1_b'],
      p['in_w'], p['in_b'],
      p['out_w'], p['out_b'],
      p['ln2_w'], p['ln2_b'],
      p['fc_w'], p['fc_b'],
      p['proj_w'], p['proj_b'])


def transformer_forward(x_sbd, layer_params, n_head):
    # Public layout is (seq, batch, d_model), matching the PyTorch module
    # (batch_first=False).  The boundary transposes stay in plain JAX.
    # TODO(synk): prefetch next-layer weights across pallas_calls (P10).
    x = jnp.transpose(x_sbd, (1, 0, 2))          # -> (batch, seq, d_model)
    for p in layer_params:
        x = residual_attention_block(x, p, n_head)
    return jnp.transpose(x, (1, 0, 2))           # -> (seq, batch, d_model)


# ----------------------------------------------------------------------------
# Parameters + pure-JAX reference
# ----------------------------------------------------------------------------
def init_transformer_params(key, width, layers, n_head):
    """Deterministic synthetic params.  Returns (kernel_params, ref_params):
    kernel params are pre-transposed (y = x @ W + b), large weights bf16, and
    the 1/sqrt(Dh) query scale is folded into in_proj; ref params keep the
    exact PyTorch layout in fp32."""
    D = width
    Dh = D // n_head
    scale = 1.0 / (Dh ** 0.5)
    kparams, rparams = [], []
    for i in range(layers):
        ks = jax.random.split(jax.random.fold_in(key, i), 8)
        nrm = lambda k, shape: 0.02 * jax.random.normal(k, shape, jnp.float32)
        in_w = nrm(ks[0], (3 * D, D))            # torch (3D, D)
        in_b = nrm(ks[1], (3 * D,))
        out_w = nrm(ks[2], (D, D))               # torch (D, D)
        out_b = nrm(ks[3], (D,))
        fc_w = nrm(ks[4], (4 * D, D))            # torch (4D, D)
        fc_b = nrm(ks[5], (4 * D,))
        pr_w = nrm(ks[6], (D, 4 * D))            # torch (D, 4D)
        pr_b = nrm(ks[7], (D,))
        ln1_w = jnp.ones((D,), jnp.float32); ln1_b = jnp.zeros((D,), jnp.float32)
        ln2_w = jnp.ones((D,), jnp.float32); ln2_b = jnp.zeros((D,), jnp.float32)

        rparams.append(dict(in_w=in_w, in_b=in_b, out_w=out_w, out_b=out_b,
                            fc_w=fc_w, fc_b=fc_b, proj_w=pr_w, proj_b=pr_b,
                            ln1_w=ln1_w, ln1_b=ln1_b, ln2_w=ln2_w, ln2_b=ln2_b))

        # Fold the query scale into the q rows of in_proj (weight AND bias).
        qscale = jnp.concatenate([jnp.full((D,), scale, jnp.float32),
                                  jnp.ones((2 * D,), jnp.float32)])
        in_w_k = (in_w * qscale[:, None]).T.astype(jnp.bfloat16)     # (D, 3D)
        in_b_k = (in_b * qscale).reshape(1, 3 * D)

        kparams.append({
            'ln1_w': ln1_w.reshape(1, D), 'ln1_b': ln1_b.reshape(1, D),
            'in_w': in_w_k, 'in_b': in_b_k,
            'out_w': out_w.T.astype(jnp.bfloat16), 'out_b': out_b.reshape(1, D),
            'ln2_w': ln2_w.reshape(1, D), 'ln2_b': ln2_b.reshape(1, D),
            'fc_w': fc_w.T.astype(jnp.bfloat16), 'fc_b': fc_b.reshape(1, 4 * D),
            'proj_w': pr_w.T.astype(jnp.bfloat16), 'proj_b': pr_b.reshape(1, D),
        })
    return kparams, rparams


def reference_forward(x_sbd, ref_params, n_head):
    """Pure-JAX fp32 reference with the exact PyTorch math/layout."""
    x = x_sbd.astype(jnp.float32)
    S, B, D = x.shape
    H = n_head
    Dh = D // H
    scale = 1.0 / (Dh ** 0.5)

    def ln(t, w, b, eps=1e-5):
        m = jnp.mean(t, -1, keepdims=True)
        v = jnp.mean(jnp.square(t - m), -1, keepdims=True)
        return (t - m) * jax.lax.rsqrt(v + eps) * w + b

    for p in ref_params:
        h1 = ln(x, p['ln1_w'], p['ln1_b'])
        qkv = h1 @ p['in_w'].T + p['in_b']
        q, k, v = jnp.split(qkv, 3, axis=-1)
        q = (q * scale).reshape(S, B, H, Dh)
        k = k.reshape(S, B, H, Dh)
        v = v.reshape(S, B, H, Dh)
        s = jnp.einsum('qbhd,kbhd->bhqk', q, k)
        a = jax.nn.softmax(s, axis=-1)
        o = jnp.einsum('bhqk,kbhd->qbhd', a, v).reshape(S, B, D)
        x = x + o @ p['out_w'].T + p['out_b']
        h2 = ln(x, p['ln2_w'], p['ln2_b'])
        hdn = h2 @ p['fc_w'].T + p['fc_b']
        hdn = hdn * jax.nn.sigmoid(1.702 * hdn)
        x = x + hdn @ p['proj_w'].T + p['proj_b']
    return x


# ----------------------------------------------------------------------------
if __name__ == "__main__":
    # Small shapes consistent with the module: width=32, heads=4, layers=2,
    # sequence length 8, batch 2.  attn_mask is None (Transformer default).
    SEQ, BATCH, WIDTH, HEADS, LAYERS = 8, 2, 32, 4, 2

    key = jax.random.PRNGKey(0)
    k_x, k_p = jax.random.split(key)
    x = jax.random.normal(k_x, (SEQ, BATCH, WIDTH), jnp.float32)   # (S, B, D)
    kparams, rparams = init_transformer_params(k_p, WIDTH, LAYERS, HEADS)

    # Capability probes (fused head path / single-buffered weights) run once,
    # outside jit; unsupported features fall back to known-good code paths.
    warmup_transformer(BATCH, SEQ, WIDTH, HEADS)

    fwd = jax.jit(functools.partial(transformer_forward, n_head=HEADS))
    out = jax.block_until_ready(fwd(x, kparams))
    assert out.shape == (SEQ, BATCH, WIDTH), out.shape

    ref = reference_forward(x, rparams, HEADS)
    max_err = float(jnp.max(jnp.abs(out - ref)))
    assert max_err < 5e-2, f"max abs error too large: {max_err}"
    print("KERNEL_OK")
</pallas_src>

<mosaic_0001>
module attributes {stable_mosaic.version = 11 : i64} {
  func.func @kb(%arg0: i32, %arg1: memref<8x128xf32, #tpu.memory_space<vmem>>, %arg2: memref<8x128xf32, #tpu.memory_space<vmem>>, %arg3: memref<8x128xf32, #tpu.memory_space<vmem>>) attributes {dimension_semantics = [#tpu.dimension_semantics<arbitrary>], iteration_bounds = array<i64: 2>, scalar_prefetch = 0 : i64, scratch_operands = 0 : i64, tpu.core_type = #tpu.core_type<tc>, window_params = [{transform_indices = @transform_0, window_bounds = array<i64: 8, 128>}, {pipeline_mode = #tpu.pipeline_mode<synchronous>, transform_indices = @transform_1, window_bounds = array<i64: 8, 128>}, {transform_indices = @transform_2, window_bounds = array<i64: 8, 128>}]} {
    %c0 = arith.constant 0 : index
    %c0_0 = arith.constant 0 : index
    %0 = vector.load %arg1[%c0, %c0_0] : memref<8x128xf32, #tpu.memory_space<vmem>>, vector<8x128xf32>
    %c0_1 = arith.constant 0 : index
    %c0_2 = arith.constant 0 : index
    %1 = vector.load %arg2[%c0_1, %c0_2] : memref<8x128xf32, #tpu.memory_space<vmem>>, vector<8x128xf32>
    %2 = arith.addf %0, %1 : vector<8x128xf32>
    %c0_3 = arith.constant 0 : index
    %c0_4 = arith.constant 0 : index
    %3 = vector.load %arg3[%c0_3, %c0_4] : memref<8x128xf32, #tpu.memory_space<vmem>>, vector<8x128xf32>
    tpu.vector_store %arg3[%c0_3, %c0_4], %2 {strides = array<i32>} : memref<8x128xf32, #tpu.memory_space<vmem>>, vector<8x128xf32>,
    return
  }
  func.func @transform_0(%arg0: i32) -> (i32, i32) {
    %c0_i32 = arith.constant 0 : i32
    %c0_i32_0 = arith.constant 0 : i32
    return %arg0, %c0_i32 : i32, i32
  }
  func.func @transform_1(%arg0: i32) -> (i32, i32) {
    %c0_i32 = arith.constant 0 : i32
    %c0_i32_0 = arith.constant 0 : i32
    %c0_i32_1 = arith.constant 0 : i32
    return %c0_i32, %c0_i32_0 : i32, i32
  }
  func.func @transform_2(%arg0: i32) -> (i32, i32) {
    %c0_i32 = arith.constant 0 : i32
    %c0_i32_0 = arith.constant 0 : i32
    return %arg0, %c0_i32 : i32, i32
  }
}

module attributes {stable_mosaic.version = 11 : i64} {
  func.func @probe_kernel(%arg0: memref<1x8x32xf32, #tpu.memory_space<vmem>>, %arg1: memref<4x8x8xbf16, #tpu.memory_space<vmem>>, %arg2: memref<1x8x32xf32, #tpu.memory_space<vmem>>) attributes {dimension_semantics = [], scalar_prefetch = 0 : i64, scratch_operands = 0 : i64, tpu.core_type = #tpu.core_type<tc>} {
    %c0 = arith.constant 0 : index
    %c0_0 = arith.constant 0 : index
    %c0_1 = arith.constant 0 : index
    %0 = vector.load %arg0[%c0, %c0_0, %c0_1] : memref<1x8x32xf32, #tpu.memory_space<vmem>>, vector<1x8x32xf32>
    %1 = vector.shape_cast %0 : vector<1x8x32xf32> to vector<8x32xf32>
    %2 = arith.truncf %1 : vector<8x32xf32> to vector<8x32xbf16>
    %3 = vector.shape_cast %2 : vector<8x32xbf16> to vector<1x8x4x8xbf16>
    %4 = tpu.transpose %3, [0, 2, 1, 3] : vector<1x8x4x8xbf16> -> vector<1x4x8x8xbf16>
    %5 = vector.shape_cast %4 : vector<1x4x8x8xbf16> to vector<4x8x8xbf16>
    %c0_2 = arith.constant 0 : index
    %c0_3 = arith.constant 0 : index
    %c0_4 = arith.constant 0 : index
    %6 = vector.load %arg1[%c0_2, %c0_3, %c0_4] : memref<4x8x8xbf16, #tpu.memory_space<vmem>>, vector<4x8x8xbf16>
    tpu.vector_store %arg1[%c0_2, %c0_3, %c0_4], %5 {strides = array<i32>} : memref<4x8x8xbf16, #tpu.memory_space<vmem>>, vector<4x8x8xbf16>,
    %7 = arith.extf %5 : vector<4x8x8xbf16> to vector<4x8x8xf32>
    %8 = vector.shape_cast %7 : vector<4x8x8xf32> to vector<1x4x8x8xf32>
    %9 = tpu.transpose %8, [0, 2, 1, 3] : vector<1x4x8x8xf32> -> vector<1x8x4x8xf32>
    %10 = vector.shape_cast %9 : vector<1x8x4x8xf32> to vector<8x32xf32>
    %11 = vector.shape_cast %10 : vector<8x32xf32> to vector<1x8x32xf32>
    %c0_5 = arith.constant 0 : index
    %c0_6 = arith.constant 0 : index
    %c0_7 = arith.constant 0 : index
    %12 = vector.load %arg2[%c0_5, %c0_6, %c0_7] : memref<1x8x32xf32, #tpu.memory_space<vmem>>, vector<1x8x32xf32>
    tpu.vector_store %arg2[%c0_5, %c0_6, %c0_7], %11 {strides = array<i32>} : memref<1x8x32xf32, #tpu.memory_space<vmem>>, vector<1x8x32xf32>,
    return
  }
}

module attributes {stable_mosaic.version = 11 : i64} {
  func.func @resblock_kernel(%arg0: i32, %arg1: memref<1x8x32xf32, #tpu.memory_space<vmem>>, %arg2: memref<1x32xf32, #tpu.memory_space<vmem>>, %arg3: memref<1x32xf32, #tpu.memory_space<vmem>>, %arg4: memref<32x96xbf16, #tpu.memory_space<vmem>>, %arg5: memref<1x96xf32, #tpu.memory_space<vmem>>, %arg6: memref<32x32xbf16, #tpu.memory_space<vmem>>, %arg7: memref<1x32xf32, #tpu.memory_space<vmem>>, %arg8: memref<1x32xf32, #tpu.memory_space<vmem>>, %arg9: memref<1x32xf32, #tpu.memory_space<vmem>>, %arg10: memref<32x128xbf16, #tpu.memory_space<vmem>>, %arg11: memref<1x128xf32, #tpu.memory_space<vmem>>, %arg12: memref<128x32xbf16, #tpu.memory_space<vmem>>, %arg13: memref<1x32xf32, #tpu.memory_space<vmem>>, %arg14: memref<1x8x32xf32, #tpu.memory_space<vmem>>) attributes {dimension_semantics = [#tpu.dimension_semantics<parallel>], iteration_bounds = array<i64: 2>, scalar_prefetch = 0 : i64, scratch_operands = 0 : i64, tpu.core_type = #tpu.core_type<tc>, window_params = [{transform_indices = @transform_0, window_bounds = array<i64: 1, 8, 32>}, {pipeline_mode = #tpu.pipeline_mode<synchronous>, transform_indices = @transform_1, window_bounds = array<i64: 1, 32>}, {pipeline_mode = #tpu.pipeline_mode<synchronous>, transform_indices = @transform_2, window_bounds = array<i64: 1, 32>}, {pipeline_mode = #tpu.pipeline_mode<synchronous>, transform_indices = @transform_3, window_bounds = array<i64: 32, 96>}, {pipeline_mode = #tpu.pipeline_mode<synchronous>, transform_indices = @transform_4, window_bounds = array<i64: 1, 96>}, {pipeline_mode = #tpu.pipeline_mode<synchronous>, transform_indices = @transform_5, window_bounds = array<i64: 32, 32>}, {pipeline_mode = #tpu.pipeline_mode<synchronous>, transform_indices = @transform_6, window_bounds = array<i64: 1, 32>}, {pipeline_mode = #tpu.pipeline_mode<synchronous>, transform_indices = @transform_7, window_bounds = array<i64: 1, 32>}, {pipeline_mode = #tpu.pipeline_mode<synchronous>, transform_indices = @transform_8, window_bounds = array<i64: 1, 32>}, {pipeline_mode = #tpu.pipeline_mode<synchronous>, transform_indices = @transform_9, window_bounds = array<i64: 32, 128>}, {pipeline_mode = #tpu.pipeline_mode<synchronous>, transform_indices = @transform_10, window_bounds = array<i64: 1, 128>}, {pipeline_mode = #tpu.pipeline_mode<synchronous>, transform_indices = @transform_11, window_bounds = array<i64: 128, 32>}, {pipeline_mode = #tpu.pipeline_mode<synchronous>, transform_indices = @transform_12, window_bounds = array<i64: 1, 32>}, {transform_indices = @transform_13, window_bounds = array<i64: 1, 8, 32>}]} {
    %c0 = arith.constant 0 : index
    %c0_0 = arith.constant 0 : index
    %c0_1 = arith.constant 0 : index
    %0 = vector.load %arg1[%c0, %c0_0, %c0_1] : memref<1x8x32xf32, #tpu.memory_space<vmem>>, vector<1x8x32xf32>
    %1 = vector.shape_cast %0 : vector<1x8x32xf32> to vector<8x32xf32>
    %c0_2 = arith.constant 0 : index
    %c0_3 = arith.constant 0 : index
    %2 = vector.load %arg2[%c0_2, %c0_3] : memref<1x32xf32, #tpu.memory_space<vmem>>, vector<1x32xf32>
    %c0_4 = arith.constant 0 : index
    %c0_5 = arith.constant 0 : index
    %3 = vector.load %arg3[%c0_4, %c0_5] : memref<1x32xf32, #tpu.memory_space<vmem>>, vector<1x32xf32>
    %cst = arith.constant dense<0.000000e+00> : vector<8xf32>
    %4 = vector.multi_reduction <add>, %1, %cst [1] : vector<8x32xf32> to vector<8xf32>
    %5 = vector.shape_cast %4 : vector<8xf32> to vector<8x1xf32>
    %cst_6 = arith.constant 3.200000e+01 : f32
    %6 = vector.broadcast %cst_6 : f32 to vector<8x1xf32>
    %7 = arith.divf %5, %6 : vector<8x1xf32>
    %8 = vector.broadcast %7 : vector<8x1xf32> to vector<8x32xf32>
    %9 = arith.subf %1, %8 : vector<8x32xf32>
    %10 = arith.mulf %9, %9 : vector<8x32xf32>
    %cst_7 = arith.constant dense<0.000000e+00> : vector<8xf32>
    %11 = vector.multi_reduction <add>, %10, %cst_7 [1] : vector<8x32xf32> to vector<8xf32>
    %12 = vector.shape_cast %11 : vector<8xf32> to vector<8x1xf32>
    %cst_8 = arith.constant 3.200000e+01 : f32
    %13 = vector.broadcast %cst_8 : f32 to vector<8x1xf32>
    %14 = arith.divf %12, %13 : vector<8x1xf32>
    %15 = vector.broadcast %7 : vector<8x1xf32> to vector<8x32xf32>
    %16 = arith.subf %1, %15 : vector<8x32xf32>
    %cst_9 = arith.constant 9.99999974E-6 : f32
    %17 = vector.broadcast %cst_9 : f32 to vector<8x1xf32>
    %18 = arith.addf %14, %17 : vector<8x1xf32>
    %19 = math.rsqrt %18 : vector<8x1xf32>
    %20 = vector.broadcast %19 : vector<8x1xf32> to vector<8x32xf32>
    %21 = arith.mulf %16, %20 : vector<8x32xf32>
    %22 = vector.broadcast %2 : vector<1x32xf32> to vector<8x32xf32>
    %23 = arith.mulf %21, %22 : vector<8x32xf32>
    %24 = vector.broadcast %3 : vector<1x32xf32> to vector<8x32xf32>
    %25 = arith.addf %23, %24 : vector<8x32xf32>
    %26 = arith.truncf %25 : vector<8x32xf32> to vector<8x32xbf16>
    %c0_10 = arith.constant 0 : index
    %c0_11 = arith.constant 0 : index
    %27 = vector.load %arg4[%c0_10, %c0_11] : memref<32x96xbf16, #tpu.memory_space<vmem>>, vector<32x96xbf16>
    %cst_12 = arith.constant dense<0.000000e+00> : vector<8x96xf32>
    %28 = tpu.matmul %26, %27, %cst_12 {dimension_numbers = #tpu.dot_dimension_numbers<[1], [0], [0], [1], [0, 0, 1, 1], [], []>} : vector<8x32xbf16>, vector<32x96xbf16>, vector<8x96xf32> -> vector<8x96xf32>
    %c0_13 = arith.constant 0 : index
    %c0_14 = arith.constant 0 : index
    %29 = vector.load %arg5[%c0_13, %c0_14] : memref<1x96xf32, #tpu.memory_space<vmem>>, vector<1x96xf32>
    %30 = vector.broadcast %29 : vector<1x96xf32> to vector<8x96xf32>
    %31 = arith.addf %28, %30 : vector<8x96xf32>
    %32 = arith.truncf %31 : vector<8x96xf32> to vector<8x96xbf16>
    %33 = vector.extract_strided_slice %32 {offsets = [0, 0], sizes = [8, 32], strides = [1, 1]} : vector<8x96xbf16> to vector<8x32xbf16>
    %34 = vector.extract_strided_slice %32 {offsets = [0, 32], sizes = [8, 32], strides = [1, 1]} : vector<8x96xbf16> to vector<8x32xbf16>
    %35 = vector.extract_strided_slice %32 {offsets = [0, 64], sizes = [8, 32], strides = [1, 1]} : vector<8x96xbf16> to vector<8x32xbf16>
    %36 = vector.shape_cast %33 : vector<8x32xbf16> to vector<1x8x32xbf16>
    %37 = vector.shape_cast %34 : vector<8x32xbf16> to vector<1x8x32xbf16>
    %38 = vector.shape_cast %35 : vector<8x32xbf16> to vector<1x8x32xbf16>
    %39 = vector.extract_strided_slice %36 {offsets = [0, 0, 0], sizes = [1, 8, 8], strides = [1, 1, 1]} : vector<1x8x32xbf16> to vector<1x8x8xbf16>
    %40 = vector.extract_strided_slice %37 {offsets = [0, 0, 0], sizes = [1, 8, 8], strides = [1, 1, 1]} : vector<1x8x32xbf16> to vector<1x8x8xbf16>
    "tpu.trace_start"() <{level = 10 : i32, message = "bqd,bkd->bqk"}> : () -> ()
    %cst_15 = arith.constant dense<0.000000e+00> : vector<1x8x8xf32>
    %41 = tpu.matmul %39, %40, %cst_15 {dimension_numbers = #tpu.dot_dimension_numbers<[2], [2], [1], [1], [0, 0, 0, 1, 1, 1], [0], [0]>} : vector<1x8x8xbf16>, vector<1x8x8xbf16>, vector<1x8x8xf32> -> vector<1x8x8xf32>
    "tpu.trace_stop"() : () -> ()
    %cst_16 = arith.constant dense<0xFF800000> : vector<1x8xf32>
    %42 = vector.multi_reduction <maximumf>, %41, %cst_16 [2] : vector<1x8x8xf32> to vector<1x8xf32>
    %43 = vector.shape_cast %42 : vector<1x8xf32> to vector<1x8x1xf32>
    %44 = vector.broadcast %43 : vector<1x8x1xf32> to vector<1x8x8xf32>
    %45 = arith.subf %41, %44 : vector<1x8x8xf32>
    %46 = math.exp %45 : vector<1x8x8xf32>
    %cst_17 = arith.constant dense<0.000000e+00> : vector<1x8xf32>
    %47 = vector.multi_reduction <add>, %46, %cst_17 [2] : vector<1x8x8xf32> to vector<1x8xf32>
    %48 = vector.shape_cast %47 : vector<1x8xf32> to vector<1x8x1xf32>
    %49 = arith.truncf %46 : vector<1x8x8xf32> to vector<1x8x8xbf16>
    %50 = vector.extract_strided_slice %38 {offsets = [0, 0, 0], sizes = [1, 8, 8], strides = [1, 1, 1]} : vector<1x8x32xbf16> to vector<1x8x8xbf16>
    "tpu.trace_start"() <{level = 10 : i32, message = "bqk,bkd->bqd"}> : () -> ()
    %cst_18 = arith.constant dense<0.000000e+00> : vector<1x8x8xf32>
    %51 = tpu.matmul %49, %50, %cst_18 {dimension_numbers = #tpu.dot_dimension_numbers<[2], [1], [1], [2], [0, 0, 0, 1, 1, 2], [0], [0]>} : vector<1x8x8xbf16>, vector<1x8x8xbf16>, vector<1x8x8xf32> -> vector<1x8x8xf32>
    "tpu.trace_stop"() : () -> ()
    %52 = tpu.reciprocal %48 {approx = true} : vector<1x8x1xf32> -> vector<1x8x1xf32>
    %53 = vector.broadcast %52 : vector<1x8x1xf32> to vector<1x8x8xf32>
    %54 = arith.mulf %51, %53 : vector<1x8x8xf32>
    %55 = vector.extract_strided_slice %36 {offsets = [0, 0, 8], sizes = [1, 8, 8], strides = [1, 1, 1]} : vector<1x8x32xbf16> to vector<1x8x8xbf16>
    %56 = vector.extract_strided_slice %37 {offsets = [0, 0, 8], sizes = [1, 8, 8], strides = [1, 1, 1]} : vector<1x8x32xbf16> to vector<1x8x8xbf16>
    "tpu.trace_start"() <{level = 10 : i32, message = "bqd,bkd->bqk"}> : () -> ()
    %cst_19 = arith.constant dense<0.000000e+00> : vector<1x8x8xf32>
    %57 = tpu.matmul %55, %56, %cst_19 {dimension_numbers = #tpu.dot_dimension_numbers<[2], [2], [1], [1], [0, 0, 0, 1, 1, 1], [0], [0]>} : vector<1x8x8xbf16>, vector<1x8x8xbf16>, vector<1x8x8xf32> -> vector<1x8x8xf32>
    "tpu.trace_stop"() : () -> ()
    %cst_20 = arith.constant dense<0xFF800000> : vector<1x8xf32>
    %58 = vector.multi_reduction <maximumf>, %57, %cst_20 [2] : vector<1x8x8xf32> to vector<1x8xf32>
    %59 = vector.shape_cast %58 : vector<1x8xf32> to vector<1x8x1xf32>
    %60 = vector.broadcast %59 : vector<1x8x1xf32> to vector<1x8x8xf32>
    %61 = arith.subf %57, %60 : vector<1x8x8xf32>
    %62 = math.exp %61 : vector<1x8x8xf32>
    %cst_21 = arith.constant dense<0.000000e+00> : vector<1x8xf32>
    %63 = vector.multi_reduction <add>, %62, %cst_21 [2] : vector<1x8x8xf32> to vector<1x8xf32>
    %64 = vector.shape_cast %63 : vector<1x8xf32> to vector<1x8x1xf32>
    %65 = arith.truncf %62 : vector<1x8x8xf32> to vector<1x8x8xbf16>
    %66 = vector.extract_strided_slice %38 {offsets = [0, 0, 8], sizes = [1, 8, 8], strides = [1, 1, 1]} : vector<1x8x32xbf16> to vector<1x8x8xbf16>
    "tpu.trace_start"() <{level = 10 : i32, message = "bqk,bkd->bqd"}> : () -> ()
    %cst_22 = arith.constant dense<0.000000e+00> : vector<1x8x8xf32>
    %67 = tpu.matmul %65, %66, %cst_22 {dimension_numbers = #tpu.dot_dimension_numbers<[2], [1], [1], [2], [0, 0, 0, 1, 1, 2], [0], [0]>} : vector<1x8x8xbf16>, vector<1x8x8xbf16>, vector<1x8x8xf32> -> vector<1x8x8xf32>
    "tpu.trace_stop"() : () -> ()
    %68 = tpu.reciprocal %64 {approx = true} : vector<1x8x1xf32> -> vector<1x8x1xf32>
    %69 = vector.broadcast %68 : vector<1x8x1xf32> to vector<1x8x8xf32>
    %70 = arith.mulf %67, %69 : vector<1x8x8xf32>
    %71 = vector.extract_strided_slice %36 {offsets = [0, 0, 16], sizes = [1, 8, 8], strides = [1, 1, 1]} : vector<1x8x32xbf16> to vector<1x8x8xbf16>
    %72 = vector.extract_strided_slice %37 {offsets = [0, 0, 16], sizes = [1, 8, 8], strides = [1, 1, 1]} : vector<1x8x32xbf16> to vector<1x8x8xbf16>
    "tpu.trace_start"() <{level = 10 : i32, message = "bqd,bkd->bqk"}> : () -> ()
    %cst_23 = arith.constant dense<0.000000e+00> : vector<1x8x8xf32>
    %73 = tpu.matmul %71, %72, %cst_23 {dimension_numbers = #tpu.dot_dimension_numbers<[2], [2], [1], [1], [0, 0, 0, 1, 1, 1], [0], [0]>} : vector<1x8x8xbf16>, vector<1x8x8xbf16>, vector<1x8x8xf32> -> vector<1x8x8xf32>
    "tpu.trace_stop"() : () -> ()
    %cst_24 = arith.constant dense<0xFF800000> : vector<1x8xf32>
    %74 = vector.multi_reduction <maximumf>, %73, %cst_24 [2] : vector<1x8x8xf32> to vector<1x8xf32>
    %75 = vector.shape_cast %74 : vector<1x8xf32> to vector<1x8x1xf32>
    %76 = vector.broadcast %75 : vector<1x8x1xf32> to vector<1x8x8xf32>
    %77 = arith.subf %73, %76 : vector<1x8x8xf32>
    %78 = math.exp %77 : vector<1x8x8xf32>
    %cst_25 = arith.constant dense<0.000000e+00> : vector<1x8xf32>
    %79 = vector.multi_reduction <add>, %78, %cst_25 [2] : vector<1x8x8xf32> to vector<1x8xf32>
    %80 = vector.shape_cast %79 : vector<1x8xf32> to vector<1x8x1xf32>
    %81 = arith.truncf %78 : vector<1x8x8xf32> to vector<1x8x8xbf16>
    %82 = vector.extract_strided_slice %38 {offsets = [0, 0, 16], sizes = [1, 8, 8], strides = [1, 1, 1]} : vector<1x8x32xbf16> to vector<1x8x8xbf16>
    "tpu.trace_start"() <{level = 10 : i32, message = "bqk,bkd->bqd"}> : () -> ()
    %cst_26 = arith.constant dense<0.000000e+00> : vector<1x8x8xf32>
    %83 = tpu.matmul %81, %82, %cst_26 {dimension_numbers = #tpu.dot_dimension_numbers<[2], [1], [1], [2], [0, 0, 0, 1, 1, 2], [0], [0]>} : vector<1x8x8xbf16>, vector<1x8x8xbf16>, vector<1x8x8xf32> -> vector<1x8x8xf32>
    "tpu.trace_stop"() : () -> ()
    %84 = tpu.reciprocal %80 {approx = true} : vector<1x8x1xf32> -> vector<1x8x1xf32>
    %85 = vector.broadcast %84 : vector<1x8x1xf32> to vector<1x8x8xf32>
    %86 = arith.mulf %83, %85 : vector<1x8x8xf32>
    %87 = vector.extract_strided_slice %36 {offsets = [0, 0, 24], sizes = [1, 8, 8], strides = [1, 1, 1]} : vector<1x8x32xbf16> to vector<1x8x8xbf16>
    %88 = vector.extract_strided_slice %37 {offsets = [0, 0, 24], sizes = [1, 8, 8], strides = [1, 1, 1]} : vector<1x8x32xbf16> to vector<1x8x8xbf16>
    "tpu.trace_start"() <{level = 10 : i32, message = "bqd,bkd->bqk"}> : () -> ()
    %cst_27 = arith.constant dense<0.000000e+00> : vector<1x8x8xf32>
    %89 = tpu.matmul %87, %88, %cst_27 {dimension_numbers = #tpu.dot_dimension_numbers<[2], [2], [1], [1], [0, 0, 0, 1, 1, 1], [0], [0]>} : vector<1x8x8xbf16>, vector<1x8x8xbf16>, vector<1x8x8xf32> -> vector<1x8x8xf32>
    "tpu.trace_stop"() : () -> ()
    %cst_28 = arith.constant dense<0xFF800000> : vector<1x8xf32>
    %90 = vector.multi_reduction <maximumf>, %89, %cst_28 [2] : vector<1x8x8xf32> to vector<1x8xf32>
    %91 = vector.shape_cast %90 : vector<1x8xf32> to vector<1x8x1xf32>
    %92 = vector.broadcast %91 : vector<1x8x1xf32> to vector<1x8x8xf32>
    %93 = arith.subf %89, %92 : vector<1x8x8xf32>
    %94 = math.exp %93 : vector<1x8x8xf32>
    %cst_29 = arith.constant dense<0.000000e+00> : vector<1x8xf32>
    %95 = vector.multi_reduction <add>, %94, %cst_29 [2] : vector<1x8x8xf32> to vector<1x8xf32>
    %96 = vector.shape_cast %95 : vector<1x8xf32> to vector<1x8x1xf32>
    %97 = arith.truncf %94 : vector<1x8x8xf32> to vector<1x8x8xbf16>
    %98 = vector.extract_strided_slice %38 {offsets = [0, 0, 24], sizes = [1, 8, 8], strides = [1, 1, 1]} : vector<1x8x32xbf16> to vector<1x8x8xbf16>
    "tpu.trace_start"() <{level = 10 : i32, message = "bqk,bkd->bqd"}> : () -> ()
    %cst_30 = arith.constant dense<0.000000e+00> : vector<1x8x8xf32>
    %99 = tpu.matmul %97, %98, %cst_30 {dimension_numbers = #tpu.dot_dimension_numbers<[2], [1], [1], [2], [0, 0, 0, 1, 1, 2], [0], [0]>} : vector<1x8x8xbf16>, vector<1x8x8xbf16>, vector<1x8x8xf32> -> vector<1x8x8xf32>
    "tpu.trace_stop"() : () -> ()
    %100 = tpu.reciprocal %96 {approx = true} : vector<1x8x1xf32> -> vector<1x8x1xf32>
    %101 = vector.broadcast %100 : vector<1x8x1xf32> to vector<1x8x8xf32>
    %102 = arith.mulf %99, %101 : vector<1x8x8xf32>
    %103 = tpu.concatenate %54, %70, %86, %102 in 2 : vector<1x8x8xf32>, vector<1x8x8xf32>, vector<1x8x8xf32>, vector<1x8x8xf32> -> vector<1x8x32xf32>
    %104 = vector.shape_cast %103 : vector<1x8x32xf32> to vector<8x32xf32>
    %105 = arith.truncf %104 : vector<8x32xf32> to vector<8x32xbf16>
    %c0_31 = arith.constant 0 : index
    %c0_32 = arith.constant 0 : index
    %106 = vector.load %arg6[%c0_31, %c0_32] : memref<32x32xbf16, #tpu.memory_space<vmem>>, vector<32x32xbf16>
    %cst_33 = arith.constant dense<0.000000e+00> : vector<8x32xf32>
    %107 = tpu.matmul %105, %106, %cst_33 {dimension_numbers = #tpu.dot_dimension_numbers<[1], [0], [0], [1], [0, 0, 1, 1], [], []>} : vector<8x32xbf16>, vector<32x32xbf16>, vector<8x32xf32> -> vector<8x32xf32>
    %c0_34 = arith.constant 0 : index
    %c0_35 = arith.constant 0 : index
    %108 = vector.load %arg7[%c0_34, %c0_35] : memref<1x32xf32, #tpu.memory_space<vmem>>, vector<1x32xf32>
    %109 = vector.broadcast %108 : vector<1x32xf32> to vector<8x32xf32>
    %110 = arith.addf %107, %109 : vector<8x32xf32>
    %111 = arith.addf %1, %110 : vector<8x32xf32>
    %c0_36 = arith.constant 0 : index
    %c0_37 = arith.constant 0 : index
    %112 = vector.load %arg8[%c0_36, %c0_37] : memref<1x32xf32, #tpu.memory_space<vmem>>, vector<1x32xf32>
    %c0_38 = arith.constant 0 : index
    %c0_39 = arith.constant 0 : index
    %113 = vector.load %arg9[%c0_38, %c0_39] : memref<1x32xf32, #tpu.memory_space<vmem>>, vector<1x32xf32>
    %cst_40 = arith.constant dense<0.000000e+00> : vector<8xf32>
    %114 = vector.multi_reduction <add>, %111, %cst_40 [1] : vector<8x32xf32> to vector<8xf32>
    %115 = vector.shape_cast %114 : vector<8xf32> to vector<8x1xf32>
    %cst_41 = arith.constant 3.200000e+01 : f32
    %116 = vector.broadcast %cst_41 : f32 to vector<8x1xf32>
    %117 = arith.divf %115, %116 : vector<8x1xf32>
    %118 = vector.broadcast %117 : vector<8x1xf32> to vector<8x32xf32>
    %119 = arith.subf %111, %118 : vector<8x32xf32>
    %120 = arith.mulf %119, %119 : vector<8x32xf32>
    %cst_42 = arith.constant dense<0.000000e+00> : vector<8xf32>
    %121 = vector.multi_reduction <add>, %120, %cst_42 [1] : vector<8x32xf32> to vector<8xf32>
    %122 = vector.shape_cast %121 : vector<8xf32> to vector<8x1xf32>
    %cst_43 = arith.constant 3.200000e+01 : f32
    %123 = vector.broadcast %cst_43 : f32 to vector<8x1xf32>
    %124 = arith.divf %122, %123 : vector<8x1xf32>
    %125 = vector.broadcast %117 : vector<8x1xf32> to vector<8x32xf32>
    %126 = arith.subf %111, %125 : vector<8x32xf32>
    %cst_44 = arith.constant 9.99999974E-6 : f32
    %127 = vector.broadcast %cst_44 : f32 to vector<8x1xf32>
    %128 = arith.addf %124, %127 : vector<8x1xf32>
    %129 = math.rsqrt %128 : vector<8x1xf32>
    %130 = vector.broadcast %129 : vector<8x1xf32> to vector<8x32xf32>
    %131 = arith.mulf %126, %130 : vector<8x32xf32>
    %132 = vector.broadcast %112 : vector<1x32xf32> to vector<8x32xf32>
    %133 = arith.mulf %131, %132 : vector<8x32xf32>
    %134 = vector.broadcast %113 : vector<1x32xf32> to vector<8x32xf32>
    %135 = arith.addf %133, %134 : vector<8x32xf32>
    %136 = arith.truncf %135 : vector<8x32xf32> to vector<8x32xbf16>
    %c0_45 = arith.constant 0 : index
    %c0_46 = arith.constant 0 : index
    %137 = vector.load %arg10[%c0_45, %c0_46] : memref<32x128xbf16, #tpu.memory_space<vmem>>, vector<32x128xbf16>
    %cst_47 = arith.constant dense<0.000000e+00> : vector<8x128xf32>
    %138 = tpu.matmul %136, %137, %cst_47 {dimension_numbers = #tpu.dot_dimension_numbers<[1], [0], [0], [1], [0, 0, 1, 1], [], []>} : vector<8x32xbf16>, vector<32x128xbf16>, vector<8x128xf32> -> vector<8x128xf32>
    %c0_48 = arith.constant 0 : index
    %c0_49 = arith.constant 0 : index
    %139 = vector.load %arg11[%c0_48, %c0_49] : memref<1x128xf32, #tpu.memory_space<vmem>>, vector<1x128xf32>
    %140 = vector.broadcast %139 : vector<1x128xf32> to vector<8x128xf32>
    %141 = arith.addf %138, %140 : vector<8x128xf32>
    %cst_50 = arith.constant 1.702000e+00 : f32
    %142 = vector.broadcast %cst_50 : f32 to vector<8x128xf32>
    %143 = arith.mulf %142, %141 : vector<8x128xf32>
    %144 = arith.negf %143 : vector<8x128xf32>
    %145 = math.exp %144 : vector<8x128xf32>
    %cst_51 = arith.constant 1.000000e+00 : f32
    %146 = vector.broadcast %cst_51 : f32 to vector<8x128xf32>
    %147 = arith.addf %146, %145 : vector<8x128xf32>
    %148 = arith.divf %146, %147 : vector<8x128xf32>
    %149 = arith.mulf %141, %148 : vector<8x128xf32>
    %150 = arith.truncf %149 : vector<8x128xf32> to vector<8x128xbf16>
    %c0_52 = arith.constant 0 : index
    %c0_53 = arith.constant 0 : index
    %151 = vector.load %arg12[%c0_52, %c0_53] : memref<128x32xbf16, #tpu.memory_space<vmem>>, vector<128x32xbf16>
    %cst_54 = arith.constant dense<0.000000e+00> : vector<8x32xf32>
    %152 = tpu.matmul %150, %151, %cst_54 {dimension_numbers = #tpu.dot_dimension_numbers<[1], [0], [0], [1], [0, 0, 1, 1], [], []>} : vector<8x128xbf16>, vector<128x32xbf16>, vector<8x32xf32> -> vector<8x32xf32>
    %c0_55 = arith.constant 0 : index
    %c0_56 = arith.constant 0 : index
    %153 = vector.load %arg13[%c0_55, %c0_56] : memref<1x32xf32, #tpu.memory_space<vmem>>, vector<1x32xf32>
    %154 = vector.broadcast %153 : vector<1x32xf32> to vector<8x32xf32>
    %155 = arith.addf %152, %154 : vector<8x32xf32>
    %156 = arith.addf %111, %155 : vector<8x32xf32>
    %157 = vector.shape_cast %156 : vector<8x32xf32> to vector<1x8x32xf32>
    %c0_57 = arith.constant 0 : index
    %c0_58 = arith.constant 0 : index
    %c0_59 = arith.constant 0 : index
    %158 = vector.load %arg14[%c0_57, %c0_58, %c0_59] : memref<1x8x32xf32, #tpu.memory_space<vmem>>, vector<1x8x32xf32>
    tpu.vector_store %arg14[%c0_57, %c0_58, %c0_59], %157 {strides = array<i32>} : memref<1x8x32xf32, #tpu.memory_space<vmem>>, vector<1x8x32xf32>,
    return
  }
  func.func @transform_0(%arg0: i32) -> (i32, i32, i32) {
    %c0_i32 = arith.constant 0 : i32
    %c0_i32_0 = arith.constant 0 : i32
    %c0_i32_1 = arith.constant 0 : i32
    return %arg0, %c0_i32, %c0_i32_0 : i32, i32, i32
  }
  func.func @transform_1(%arg0: i32) -> (i32, i32) {
    %c0_i32 = arith.constant 0 : i32
    %c0_i32_0 = arith.constant 0 : i32
    %c0_i32_1 = arith.constant 0 : i32
    return %c0_i32, %c0_i32_0 : i32, i32
  }
  func.func @transform_2(%arg0: i32) -> (i32, i32) {
    %c0_i32 = arith.constant 0 : i32
    %c0_i32_0 = arith.constant 0 : i32
    %c0_i32_1 = arith.constant 0 : i32
    return %c0_i32, %c0_i32_0 : i32, i32
  }
  func.func @transform_3(%arg0: i32) -> (i32, i32) {
    %c0_i32 = arith.constant 0 : i32
    %c0_i32_0 = arith.constant 0 : i32
    %c0_i32_1 = arith.constant 0 : i32
    return %c0_i32, %c0_i32_0 : i32, i32
  }
  func.func @transform_4(%arg0: i32) -> (i32, i32) {
    %c0_i32 = arith.constant 0 : i32
    %c0_i32_0 = arith.constant 0 : i32
    %c0_i32_1 = arith.constant 0 : i32
    return %c0_i32, %c0_i32_0 : i32, i32
  }
  func.func @transform_5(%arg0: i32) -> (i32, i32) {
    %c0_i32 = arith.constant 0 : i32
    %c0_i32_0 = arith.constant 0 : i32
    %c0_i32_1 = arith.constant 0 : i32
    return %c0_i32, %c0_i32_0 : i32, i32
  }
  func.func @transform_6(%arg0: i32) -> (i32, i32) {
    %c0_i32 = arith.constant 0 : i32
    %c0_i32_0 = arith.constant 0 : i32
    %c0_i32_1 = arith.constant 0 : i32
    return %c0_i32, %c0_i32_0 : i32, i32
  }
  func.func @transform_7(%arg0: i32) -> (i32, i32) {
    %c0_i32 = arith.constant 0 : i32
    %c0_i32_0 = arith.constant 0 : i32
    %c0_i32_1 = arith.constant 0 : i32
    return %c0_i32, %c0_i32_0 : i32, i32
  }
  func.func @transform_8(%arg0: i32) -> (i32, i32) {
    %c0_i32 = arith.constant 0 : i32
    %c0_i32_0 = arith.constant 0 : i32
    %c0_i32_1 = arith.constant 0 : i32
    return %c0_i32, %c0_i32_0 : i32, i32
  }
  func.func @transform_9(%arg0: i32) -> (i32, i32) {
    %c0_i32 = arith.constant 0 : i32
    %c0_i32_0 = arith.constant 0 : i32
    %c0_i32_1 = arith.constant 0 : i32
    return %c0_i32, %c0_i32_0 : i32, i32
  }
  func.func @transform_10(%arg0: i32) -> (i32, i32) {
    %c0_i32 = arith.constant 0 : i32
    %c0_i32_0 = arith.constant 0 : i32
    %c0_i32_1 = arith.constant 0 : i32
    return %c0_i32, %c0_i32_0 : i32, i32
  }
  func.func @transform_11(%arg0: i32) -> (i32, i32) {
    %c0_i32 = arith.constant 0 : i32
    %c0_i32_0 = arith.constant 0 : i32
    %c0_i32_1 = arith.constant 0 : i32
    return %c0_i32, %c0_i32_0 : i32, i32
  }
  func.func @transform_12(%arg0: i32) -> (i32, i32) {
    %c0_i32 = arith.constant 0 : i32
    %c0_i32_0 = arith.constant 0 : i32
    %c0_i32_1 = arith.constant 0 : i32
    return %c0_i32, %c0_i32_0 : i32, i32
  }
  func.func @transform_13(%arg0: i32) -> (i32, i32, i32) {
    %c0_i32 = arith.constant 0 : i32
    %c0_i32_0 = arith.constant 0 : i32
    %c0_i32_1 = arith.constant 0 : i32
    return %arg0, %c0_i32, %c0_i32_0 : i32, i32, i32
  }
}

</mosaic_0001>

<bundles_post_ra>
// kernel: tpu_custom_call.1
= control target key start
LH: loop header
LB: loop body
LE: loop exit
PB: predicated region body
PF: predicated region fallthrough
CT: control target
= control target key end

     0   :  { %7 = vsyncpa [#allocation3], 0  ;;  %s690_s0 = inlined_call_operand.hbm [shape: f32[16,128], index: 0, kind: input, shape index: {}]   ;;  %s691_s1 = inlined_call_operand.hbm [shape: f32[8,128], index: 1, kind: input, shape index: {}]   ;;  %s692_s2 = inlined_call_operand.hbm [shape: f32[16,128], index: 2, kind: output, shape index: {}]  }
   0x1   :  { %9 = vsyncpa [#allocation3 + $0x1], 0 }
   0x2   :  { %10 = vsyncpa [#allocation6], 0 }
   0x3   :  { %11 = vsyncpa [#allocation4], 0 }
   0x4   :  { %13 = vsyncpa [#allocation4 + $0x1], 0  ;;  %s489_s9 = smov 0   ;;  %s491_s10 = smov 0  }
   0x5   :  { %s493_s11 = smov 0   ;;  %s495_s12 = smov 0  }
   0x6 LB: > { %s510_s13 = sadd.s32 4294967295, %s469_s12   ;;  %s270_s14 = sadd.s32 4294967294, %s469_s12   ;;  %s469_s12 = sphi %s495_s12, %s716_s12   ;;  %s465_s11 = sphi %s493_s11, %s715_s11   ;;  %s461_s10 = sphi %s491_s10, %s714_s10   ;;  %s457_s9 = sphi %s489_s9, %s713_s9  }
   0x7   : > { %p39_p0 = scmp.ne.s32.totalorder %s461_s10, %s457_s9  ;;  %p693_p1 = scmp.eq.s32.totalorder %s510_s13, 0 }
   0x8   : > { %p90_p3 = scmp.eq.s32.totalorder %s270_s14, 1  ;;  %p271_p5 = scmp.ge.s32.totalorder %s469_s12, 1 }
   0x9   : > { %p519_p4 = por %p693_p1, %p39_p0  ;;  %p97_p7 = scmp.lt.s32.totalorder %s469_s12, 3 }
   0xa   : > { %p524_p6 = por %p90_p3, %p39_p0  ;;  %s471_s18 = smov [#allocation5]  }
   0xb   : > { %s696_s15 = scalar_select %p519_p4, 1, 0 }
   0xc   : > { %s697_s16 = scalar_select %p524_p6, 1, 0 }
   0xd   : > { %p529_p8 = pnand %p271_p5, %p97_p7  ;;  %s110_s19 = sshll.u32 %s471_s18, 4  ;;  %s111_s19 = int_to_ptr.vmem [resolvable:$true] %s110_s19 }
   0xe   : > { %s537_s20 = sadd.s32 1, %s469_s12   ;;  %s26_s24 = sadd.s32 1, %s465_s11 }
   0xf   : > { %s698_s17 = scalar_select %p529_p8, 1, 0 }
  0x10   : > { %p292_p10 = pneg %p529_p8  ;;  %s23_s22 = ssub.s32 %s469_s12, %s537_s20 }
  0x11   : > { %p547_p12 = scmp.eq.s32.totalorder %s23_s22, 0  ;;  %s341_s27 = scalar_lea.hbm %s691_s1, 128 }
  0x12   : > { %p541_p11 = pnand %p292_p10, %p693_p1  ;;  %p342_p0 = scmp.ne.s32.totalorder %s691_s1, %s341_s27 }
  0x13   : > { %s700_s23 = scalar_select %p547_p12, 1, 0 }
  0x14   : > { %p343_p3 = pneg %p541_p11  ;;  %p348_p10 = scmp.lt.u32.totalorder %s341_s27, %s691_s1 }
  0x16   : > { %p344_p5 = pnand %p343_p3, %p342_p0 }
  0x18   : > { %p345_p7 = pneg %p344_p5 }
  0x1a   : > { %p350_p9 = pnand %p348_p10, %p345_p7 }
  0x1c   : > { %353 = shalt.err (!%p350_p9)
}
  0x1d   : > { %s354_s4 = scalar_lea.vmem %s111_s19, 128  ;;  %p362_p6 = scmp.lt.s32.totalorder %s111_s19, %s111_s19 }
  0x1e   : > { %p355_p1 = scmp.ne.s32.totalorder %s111_s19, %s354_s4  ;;  %p363_p4 = scmp.lt.s32.totalorder %s354_s4, %s354_s4 }
  0x20   : > { %p357_p2 = pnand %p355_p1, %p343_p3  ;;  %p364_p8 = por %p363_p4, %p362_p6 }
  0x22   : > { %p358_p13 = pneg %p357_p2 }
  0x24   : > { %p365_p12 = pnand %p364_p8, %p358_p13 }
  0x26   : > { %368 = shalt.err (!%p365_p12)
}
  0x27   : > { %295 = dma.hbm_to_vmem [thread:$0]  (!%p541_p11), %s691_s1, 128, %s111_s19, [#allocation6]  }
  0x28   : > { %p701_p1 = scmp.ne.s32.totalorder %s700_s23, 0  ;;  %p34_p2 = scmp.eq.s32.totalorder %s469_s12, 0 }
  0x29   : > { %p702_p4 = scmp.ne.s32.totalorder %s465_s11, %s461_s10  ;;  %p703_p6 = scmp.eq.s32.totalorder %s510_s13, 1 }
  0x2a   : > { %s573_s7 = scalar_select %p701_p1, %s465_s11, %s26_s24  }
  0x2b   : > { %p581_p8 = por %p703_p6, %p702_p4  ;;  %p305_p9 = scmp.lt.s32.totalorder %s469_s12, 2 }
  0x2c   : > { %s121_s14 = sand.u32 1, %s465_s11   ;;  %p705_p12 = pmov %p702_p4 }
  0x2d   : > { %s274_s18 = sshll.u32 %s121_s14, 3  ;;  %s275_s21 = sshll.u32 %s469_s12, 7 }
  0x2e   : > { %p35_p13 = por %p34_p2, %p705_p12  ;;  %s594_s19 = scalar_lea.hbm %s690_s0, %s275_s21 }
  0x2f   : > { %s125_s23 = scalar_lea.vmem [#allocation2], %s274_s18  ;;  %s122_s27 = scalar_lea.sflag [#allocation3], %s121_s14 }
  0x30   : > { %s132_s24 = sshll.u32 %s125_s23, 4  ;;  %p596_p11 = pnand %p305_p9, %p35_p13  ;;  %s600_s24 = int_to_ptr.vmem [resolvable:$true] %s132_s24 }
  0x31   : > { %s369_s28 = scalar_lea.hbm %s594_s19, 128  ;;  %s374_s3 = scalar_lea.hbm %s690_s0, 256 }
  0x32   : > { %p370_p0 = scmp.ne.s32.totalorder %s594_s19, %s369_s28  ;;  %p371_p3 = pneg %p596_p11 }
  0x33   : > { %p375_p10 = scmp.lt.u32.totalorder %s594_s19, %s690_s0  ;;  %p376_p1 = scmp.lt.u32.totalorder %s374_s3, %s369_s28 }
  0x34   : > { %p372_p5 = pnand %p371_p3, %p370_p0  ;;  %p378_p4 = scmp.lt.u32.totalorder %s369_s28, %s594_s19 }
  0x35   : > { %p377_p2 = por %p376_p1, %p375_p10 }
  0x36   : > { %p373_p7 = pneg %p372_p5 }
  0x37   : > { %p379_p6 = por %p378_p4, %p377_p2 }
  0x39   : > { %p380_p9 = pnand %p379_p6, %p373_p7 }
  0x3b   : > { %383 = shalt.err (!%p380_p9)
}
  0x3c   : > { %s384_s6 = scalar_lea.vmem %s600_s24, 128  ;;  %s472_s14 = smov [#allocation2]  }
  0x3d   : > { %p385_p12 = scmp.ne.s32.totalorder %s600_s24, %s384_s6  ;;  %s389_s18 = sshll.u32 %s472_s14, 4  ;;  %s390_s18 = int_to_ptr.vmem [resolvable:$false] %s389_s18 }
  0x3e   : > { %s391_s21 = scalar_lea.vmem %s390_s18, 256  ;;  %p392_p5 = scmp.lt.s32.totalorder %s600_s24, %s390_s18 }
  0x3f   : > { %p387_p13 = pnand %p385_p12, %p371_p3  ;;  %p393_p10 = scmp.lt.s32.totalorder %s391_s21, %s384_s6 }
  0x41   : > { %p388_p0 = pneg %p387_p13  ;;  %p394_p1 = por %p393_p10, %p392_p5 }
  0x43   : > { %p395_p2 = pnand %p394_p1, %p388_p0 }
  0x45   : > { %398 = shalt.err (!%p395_p2)
}
  0x46   : > { %299 = dma.hbm_to_vmem [thread:$0]  (!%p596_p11), %s594_s19, 128, %s600_s24, %s122_s27  }
  0x47   : > { %p707_p7 = scmp.ne.s32.totalorder %s698_s17, 0 }
  0x48   : > { %s630_s22 = sand.u32 (!%p707_p7), 1, %s461_s10   ;;  %p708_p3 = scmp.ne.s32.totalorder (!%p707_p7), %s696_s15, 0 }
  0x49   : > { %141 = sbr.rel (%p707_p7) target bundleno = 109 (0x6d), region = 28  ;;  %s277_s25 = sshll.u32 (!%p707_p7), %s630_s22, 3 }
  0x4a   : > { %s144_s23 = scalar_lea.sflag (!%p707_p7), [#allocation3], %s630_s22  ;;  %s147_s28 = scalar_lea.vmem (!%p707_p7), [#allocation2], %s277_s25 }
  0x50   : > { %444 = dma.done.wait (%p708_p3), %s144_s23, 128  }
  0x51   : > { %446 = vsyncadd (%p708_p3), %s144_s23, 4294967168  ;;  %p709_p4 = scmp.eq.s32.totalorder %s510_s13, 0 }
  0x53   : > { %448 = dma.done.wait (%p709_p4), [#allocation6], 128   ;;  %p710_p11 = pmov %p709_p4 }
  0x54   : > { %s171_s17 = scalar_lea.vmem [#allocation7], %s277_s25  ;;  %s281_s24 = sshll.u32 %s510_s13, 7  ;;  %v172_v0 = vld [vmem:[%s147_s28] sm:$0xff]  ;;  %v173_v1 = vld [vmem:[#allocation5] sm:$0xff] }
  0x55   : > { %450 = vsyncadd (%p710_p11), [#allocation6], 4294967168  ;;  %s190_s19 = sshll.u32 %s171_s17, 4  ;;  %v174_v2 = vadd.f32 %v173_v1, %v172_v0  ;;  %s648_s27 = scalar_lea.hbm %s692_s2, %s281_s24  ;;  %s643_s19 = int_to_ptr.vmem [resolvable:$true] %s190_s19 }
  0x56   : > { %s177_s29 = scalar_lea.sflag [#allocation4], %s630_s22  ;;  %s399_s30 = scalar_lea.vmem %s643_s19, 128 }
  0x57   : > { %175 = vst [vmem:[%s171_s17] sm:$0xff] %v174_v2  ;;  %p400_p6 = scmp.ne.s32.totalorder %s643_s19, %s399_s30  ;;  %s473_s13 = smov [#allocation7]  }
  0x58   : > { %s403_s3 = sshll.u32 %s473_s13, 4  ;;  %s404_s3 = int_to_ptr.vmem [resolvable:$false] %s403_s3 }
  0x59   : > { %p401_p9 = pnand %p400_p6, %p581_p8  ;;  %s405_s4 = scalar_lea.vmem %s404_s3, 256 }
  0x5a   : > { %p406_p13 = scmp.lt.s32.totalorder %s643_s19, %s404_s3  ;;  %p407_p0 = scmp.lt.s32.totalorder %s405_s4, %s399_s30 }
  0x5b   : > { %p402_p12 = pneg %p401_p9 }
  0x5c   : > { %p408_p5 = por %p407_p0, %p406_p13 }
  0x5e   : > { %p409_p10 = pnand %p408_p5, %p402_p12 }
  0x60   : > { %412 = shalt.err (!%p409_p10)
}
  0x61   : > { %s413_s5 = scalar_lea.hbm %s648_s27, 128  ;;  %s417_s18 = scalar_lea.hbm %s692_s2, 256 }
  0x62   : > { %p414_p1 = scmp.ne.s32.totalorder %s648_s27, %s413_s5  ;;  %p418_p3 = scmp.lt.u32.totalorder %s648_s27, %s692_s2 }
  0x63   : > { %p419_p4 = scmp.lt.u32.totalorder %s417_s18, %s413_s5  ;;  %p421_p6 = scmp.lt.u32.totalorder %s413_s5, %s648_s27 }
  0x64   : > { %p415_p2 = pnand %p414_p1, %p581_p8 }
  0x65   : > { %p420_p11 = por %p419_p4, %p418_p3 }
  0x66   : > { %p416_p7 = pneg %p415_p2 }
  0x67   : > { %p422_p9 = por %p421_p6, %p420_p11 }
  0x69   : > { %p423_p12 = pnand %p422_p9, %p416_p7 }
  0x6b   : > { %426 = shalt.err (!%p423_p12)
}
  0x6c   : > { %290 = dma.vmem_to_hbm [thread:$0]  (%p581_p8), %s643_s19, 128, %s648_s27, %s177_s29  }
  0x6d PF: > { %s202_s25 = sand.u32 1, %s457_s9   ;;  %p711_p13 = scmp.ne.s32.totalorder %s697_s16, 0 }
  0x6e   : > { %p712_p0 = scmp.ge.s32.totalorder %s469_s12, 2  ;;  %s203_s23 = scalar_lea.sflag [#allocation4], %s202_s25 }
  0x70   : > { %p301_p5 = pnand %p712_p0, %p711_p13 }
  0x72   : > { %452 = dma.done.wait (!%p301_p5), %s203_s23, 128  }
  0x73   : > { %454 = vsyncadd (!%p301_p5), %s203_s23, 4294967168  ;;  %p16_p10 = scmp.ge.s32.totalorder %s537_s20, 4   ;;  %s713_s9 = smov %s461_s10 }
  0x74   : > { %s714_s10 = smov %s465_s11  ;;  %s715_s11 = smov %s573_s7 }
  0x75   : > { %s716_s12 = smov %s537_s20  ;;  %18 = sbr.rel (!%p16_p10) target bundleno = 6 (0x6), region = 77 }
  0x7c   :  { %208 = vsyncpa [#allocation3], 1 }
  0x7d   :  { %210 = vsyncpa [#allocation3 + $0x1], 1 }
  0x7e   :  { %211 = vsyncpa [#allocation6], 1 }
  0x7f   :  { %212 = vsyncpa [#allocation4], 1 }
  0x80   :  { %214 = vsyncpa [#allocation4 + $0x1], 1 }

// kernel: tpu_custom_call.1
= control target key start
LH: loop header
LB: loop body
LE: loop exit
PB: predicated region body
PF: predicated region fallthrough
CT: control target
= control target key end

     0   :  { %8 = vsyncpa [#allocation3], 0  ;;  %s586_s0 = inlined_call_operand.hbm [shape: f32[1,8,32], index: 0, kind: input, shape index: {}]   ;;  %s587_s1 = inlined_call_operand.hbm [shape: bf16[4,8,8], index: 1, kind: output, shape index: {0}]   ;;  %s588_s2 = inlined_call_operand.hbm [shape: f32[1,8,32], index: 2, kind: output, shape index: {1}]  }
   0x1   :  { %9 = vsyncpa [#allocation4], 0 }
   0x2   :  { %10 = vsyncpa [#allocation7], 0  ;;  %s483_s9 = smov [#allocation2]   ;;  %s411_s13 = scalar_lea.hbm %s586_s0, 128 }
   0x3   :  { %s17_s10 = sshll.u32 %s483_s9, 4  ;;  %p412_p0 = scmp.ne.s32.totalorder %s586_s0, %s411_s13  ;;  %s18_s10 = int_to_ptr.vmem [resolvable:$true] %s17_s10 }
   0x4   :  { %p415_p1 = scmp.lt.u32.totalorder %s411_s13, %s586_s0 }
   0x6   :  { %p417_p2 = pnand %p415_p1, %p412_p0 }
   0x8   :  { %420 = shalt.err (!%p417_p2)
}
   0x9   :  { %s421_s18 = scalar_lea.vmem %s18_s10, 128  ;;  %p426_p4 = scmp.lt.s32.totalorder %s18_s10, %s18_s10 }
   0xa   :  { %p422_p3 = scmp.ne.s32.totalorder %s18_s10, %s421_s18  ;;  %p427_p5 = scmp.lt.s32.totalorder %s421_s18, %s421_s18 }
   0xc   :  { %p428_p6 = por %p427_p5, %p426_p4 }
   0xe   :  { %p429_p7 = pnand %p428_p6, %p422_p3 }
  0x10   :  { %432 = shalt.err (!%p429_p7)
}
  0x11   :  { %20 = dma.hbm_to_vmem [thread:$0]  %s586_s0, 128, %s18_s10, [#allocation3]  }
  0x12   :  { %477 = dma.done.wait [#allocation3], 128  }
  0x13   :  { %478 = vsyncadd [#allocation3], 4294967168  ;;  %v25_v0 = vld [vmem:[#allocation2] sm:$0xff]  ;;  %s484_s21 = smov 104   ;;  %s485_s22 = smov 120   ;;  %v37_v4 = vlaneseq  ;;  %v489_v25 = vmov 0  }
  0x14   :  { %v26_v1 = vpack.c.bf16 %v25_v0, %v25_v0  ;;  %s486_s23 = smov 112   ;;  %v487_v2 = vmov 1983009808   ;;  %v488_v7 = vmov 1934713408   ;;  %vm199_vm0 = vcmask 60416  }
  0x15   :  { %v35_v3 = vunpack.c.l.s4 %v487_v2  ;;  %v38_v6 = vshrl.u32 %v37_v4, 7  ;;  %v52_v8 = vunpack.c.l.s4 %v488_v7  ;;  %s490_s0 = smov [#allocation5]  }
  0x16   :  { %32 = vrot.lane.b32.xlu1 %v26_v1, %s484_s21  ;;  %28 = vrot.lane.b32.xlu0 %v26_v1, %s485_s22  ;;  %s369_s24 = sshll.u32 %s490_s0, 4  ;;  %s370_s24 = int_to_ptr.vmem [resolvable:$true] %s369_s24 }
  0x17   :  { %v36_v5 = vunpack.c.0.s8 %v35_v3  ;;  %v53_v10 = vunpack.c.0.s8 %v52_v8  ;;  %s433_s25 = scalar_lea.vmem %s370_s24, 256  ;;  %p438_p9 = scmp.lt.s32.totalorder %s370_s24, %s370_s24 }
  0x18   :  { %p434_p8 = scmp.ne.s32.totalorder %s370_s24, %s433_s25  ;;  %p439_p10 = scmp.lt.s32.totalorder %s433_s25, %s433_s25 }
  0x19   :  { %v524_v9 = vsub.s32 %v36_v5, %v38_v6  ;;  %v527_v14 = vsub.s32 %v53_v10, %v38_v6 }
  0x1a   :  { %30 = vrot.lane.b32.xlu0 %v26_v1, %s486_s23  ;;  %p440_p11 = por %p439_p10, %p438_p9 }
  0x1b   :  { %v40_v19 = vrot.slane %v26_v1, %v524_v9 }
  0x1c   :  { %p441_p12 = pnand %p440_p11, %p434_p8 }
  0x88   :  { %v33_v11 = vpop.permute.xlu1 %32  ;;  %v29_v12 = vpop.permute.xlu0 %28 }
  0x89   :  { %v82_v13 = vrot.slane %v33_v11, %v524_v9  ;;  %v74_v15 = vrot.slane %v29_v12, %v524_v9 }
  0x8b   :  { %v83_v16 = vcombine.low %v74_v15, %v82_v13  ;;  %v84_v17 = vcombine.high %v74_v15, %v82_v13 }
  0x8c   :  { %v31_v18 = vpop.permute.xlu0 %30 }
  0x8d   :  { %v91_v20 = vrot.slane %v83_v16, %v527_v14  ;;  %v48_v21 = vrot.slane %v31_v18, %v524_v9  ;;  %v98_v22 = vrot.slane %v84_v17, %v527_v14 }
  0x8f   :  { %v49_v23 = vcombine.low %v40_v19, %v48_v21  ;;  %v50_v24 = vcombine.high %v40_v19, %v48_v21  ;;  %v99_v26 = vcombine.high %v91_v20, %v489_v25  ;;  %v100_v29 = vcombine.high %v98_v22, %v489_v25 }
  0x90   :  { %v106_v30 = vshrl.u32 %v91_v20, 16  ;;  %v122_v36 = vshrl.u32 %v98_v22, 16 }
  0x91   :  { %v57_v27 = vrot.slane %v49_v23, %v527_v14  ;;  %v64_v28 = vrot.slane %v50_v24, %v527_v14  ;;  %v114_v35 = vshrl.u32 %v99_v26, 16  ;;  %v130_v43 = vshrl.u32 %v100_v29, 16 }
  0x93   :  { %v65_v31 = vcombine.high %v57_v27, %v489_v25  ;;  %v66_v32 = vcombine.high %v64_v28, %v489_v25  ;;  %v103_v33 = vpack.i.b16 %v91_v20, %v57_v27  ;;  %v105_v34 = vshrl.u32 %v57_v27, 16 }
  0x94   :  { %v119_v37 = vpack.i.b16 %v98_v22, %v64_v28  ;;  %v121_v38 = vshrl.u32 %v64_v28, 16 }
  0x95   :  { %v107_v39 = vpack.i.b16 %v106_v30, %v105_v34  ;;  %v111_v40 = vpack.i.b16 %v99_v26, %v65_v31  ;;  %v113_v41 = vshrl.u32 %v65_v31, 16  ;;  %v127_v42 = vpack.i.b16 %v100_v29, %v66_v32 }
  0x96   :  { %v123_v44 = vpack.i.b16 %v122_v36, %v121_v38  ;;  %v129_v45 = vshrl.u32 %v66_v32, 16  ;;  %v133_v46 = vcombine.low %v103_v33, %v119_v37 }
  0x97   :  { %v115_v47 = vpack.i.b16 %v114_v35, %v113_v41  ;;  %v141_v48 = vcombine.low %v111_v40, %v127_v42 }
  0x98   :  { %v131_v49 = vpack.i.b16 %v130_v43, %v129_v45  ;;  %v158_v50 = vcombine.low %v107_v39, %v123_v44  ;;  %v140_v51 = vrot.slane %v133_v46, %v524_v9 }
  0x99   :  { %v148_v52 = vrot.slane %v141_v48, %v524_v9 }
  0x9a   :  { %v166_v53 = vcombine.low %v115_v47, %v131_v49  ;;  %v165_v55 = vrot.slane %v158_v50, %v524_v9 }
  0x9b   :  { %v149_v54 = vcombine.low %v140_v51, %v148_v52 }
  0x9c   :  { %v173_v56 = vrot.slane %v166_v53, %v524_v9 }
  0x9d   :  { %v156_v57 = vrot.slane %v149_v54, %v527_v14 }
  0x9e   :  { %v174_v58 = vcombine.low %v165_v55, %v173_v56 }
  0x9f   :  { %v157_v59 = vcombine.high %v156_v57, %v489_v25  ;;  %v187_v63 = vshrl.u32 %v156_v57, 16 }
  0xa0   :  { %v181_v60 = vrot.slane %v174_v58, %v527_v14 }
  0xa1   :  { %v195_v3 = vshrl.u32 %v157_v59, 16 }
  0xa2   :  { %v182_v61 = vcombine.high %v181_v60, %v489_v25  ;;  %v185_v62 = vpack.i.b16 %v181_v60, %v156_v57  ;;  %v188_v0 = vshrl.u32 %v181_v60, 16 }
  0xa4   :  { %v189_v1 = vpack.i.b16 %v188_v0, %v187_v63  ;;  %v193_v2 = vpack.i.b16 %v182_v61, %v157_v59  ;;  %v196_v4 = vshrl.u32 %v182_v61, 16  ;;  %200 = vst.msk [vmem:[#allocation5] sm:$0xf] %vm199_vm0, %v185_v62  ;;  %v204_v6 = vunpack.c.l.bf16 %v185_v62 }
  0xa6   :  { %v197_v5 = vpack.i.b16 %v196_v4, %v195_v3  ;;  %v206_v7 = vunpack.c.l.bf16 %v193_v2  ;;  %201 = vst.msk [vmem:[#allocation5 + $0x4] sm:$0xf] %vm199_vm0, %v189_v1  ;;  %202 = vst.msk [vmem:[#allocation5 + $0x8] sm:$0xf] %vm199_vm0, %v193_v2  ;;  %v205_v8 = vunpack.c.l.bf16 %v189_v1 }
  0xa8   :  { %v207_v10 = vunpack.c.l.bf16 %v197_v5  ;;  %v208_v11 = vcombine.low %v204_v6, %v206_v7  ;;  %v209_v12 = vcombine.high %v204_v6, %v206_v7  ;;  %203 = vst.msk [vmem:[#allocation5 + $0xc] sm:$0xf] %vm199_vm0, %v197_v5 }
  0xaa   :  { %v224_v13 = vcombine.low %v205_v8, %v207_v10  ;;  %v225_v15 = vcombine.high %v205_v8, %v207_v10  ;;  %v216_v16 = vrot.slane %v208_v11, %v524_v9  ;;  %v223_v17 = vrot.slane %v209_v12, %v524_v9 }
  0xac   :  { %v232_v18 = vrot.slane %v224_v13, %v524_v9  ;;  %v239_v19 = vrot.slane %v225_v15, %v524_v9 }
  0xae   :  { %v240_v20 = vcombine.low %v216_v16, %v232_v18  ;;  %v241_v21 = vcombine.high %v216_v16, %v232_v18  ;;  %v256_v22 = vcombine.low %v223_v17, %v239_v19  ;;  %v257_v23 = vcombine.high %v223_v17, %v239_v19 }
  0xb0   :  { %v248_v24 = vrot.slane %v240_v20, %v527_v14  ;;  %v255_v25 = vrot.slane %v241_v21, %v527_v14  ;;  %v264_v26 = vrot.slane %v256_v22, %v527_v14  ;;  %v271_v27 = vrot.slane %v257_v23, %v527_v14 }
  0xb2   :  { %v276_v28 = vcombine.low %v248_v24, %v255_v25  ;;  %v395_v29 = vcombine.high %v248_v24, %v255_v25  ;;  %v292_v30 = vcombine.low %v264_v26, %v271_v27  ;;  %v396_v31 = vcombine.high %v264_v26, %v271_v27 }
  0xb4   :  { %v283_v32 = vrot.slane %v276_v28, %v524_v9  ;;  %v291_v33 = vrot.slane %v395_v29, %v524_v9  ;;  %v299_v34 = vrot.slane %v292_v30, %v524_v9  ;;  %v307_v35 = vrot.slane %v396_v31, %v524_v9 }
  0xb5   :  { %444 = shalt.err (!%p441_p12)
}
  0xb6   :  { %s445_s28 = scalar_lea.hbm %s587_s1, 256 }
  0xb7   :  { %p446_p13 = scmp.ne.s32.totalorder %s587_s1, %s445_s28  ;;  %p449_p0 = scmp.lt.u32.totalorder %s445_s28, %s587_s1 }
  0xb9   :  { %p451_p1 = pnand %p449_p0, %p446_p13 }
  0xbb   :  { %454 = shalt.err (!%p451_p1)
}
  0xbc   :  { %s491_s5 = smov 64   ;;  %s492_s6 = smov 4   ;;  %v309_v9 = vcombine.high %v283_v32, %v291_v33  ;;  %v325_v36 = vcombine.high %v299_v34, %v307_v35  ;;  %v308_v37 = vcombine.low %v283_v32, %v291_v33  ;;  %v324_v38 = vcombine.low %v299_v34, %v307_v35 }
  0xbd   :  { %375 = dma.vmem_to_hbm [thread:$0]  %s370_s24, 256, %s587_s1, [#allocation4], %s491_s5, %s491_s5, %s492_s6   ;;  %vm356_vm1 = vcmask 64512   ;;  %vm358_vm2 = vcmask 130048   ;;  %vm360_vm3 = vcmask 195584   ;;  %vm362_vm4 = vcmask 261120  }
  0xbe   :  { %v323_v39 = vrot.slane %v309_v9, %v527_v14  ;;  %v339_v40 = vrot.slane %v325_v36, %v527_v14  ;;  %v316_v41 = vrot.slane %v308_v37, %v527_v14  ;;  %v332_v42 = vrot.slane %v324_v38, %v527_v14  ;;  %s493_s9 = smov 16   ;;  %s494_s10 = smov 8  }
  0xbf   :  { %s495_s1 = smov 24   ;;  %s496_s11 = smov [#allocation6]  }
  0xc0   :  { %v342_v43 = vcombine.low %v323_v39, %v339_v40  ;;  %v341_v44 = vcombine.high %v316_v41, %v332_v42  ;;  %v340_v45 = vcombine.low %v316_v41, %v332_v42  ;;  %v343_v46 = vcombine.high %v323_v39, %v339_v40  ;;  %s382_s12 = sshll.u32 %s496_s11, 4  ;;  %s383_s12 = int_to_ptr.vmem [resolvable:$true] %s382_s12 }
  0xc1   :  { %s455_s13 = scalar_lea.vmem %s383_s12, 128  ;;  %p460_p3 = scmp.lt.s32.totalorder %s383_s12, %s383_s12 }
  0xc2   :  { %349 = vrot.lane.b32.xlu0 %v342_v43, %s493_s9  ;;  %345 = vrot.lane.b32.xlu1 %v341_v44, %s494_s10  ;;  %p456_p2 = scmp.ne.s32.totalorder %s383_s12, %s455_s13  ;;  %p461_p4 = scmp.lt.s32.totalorder %s455_s13, %s455_s13 }
  0xc4   :  { %p462_p5 = por %p461_p4, %p460_p3 }
  0xc6   :  { %353 = vrot.lane.b32.xlu1 %v343_v46, %s495_s1  ;;  %p463_p6 = pnand %p462_p5, %p456_p2 }
 0x134   :  { %v346_v47 = vpop.permute.xlu1 %345  ;;  %v350_v48 = vpop.permute.xlu0 %349 }
 0x135   :  { %v357_v49 = vsel %vm356_vm1, %v340_v45, %v346_v47 }
 0x136   :  { %v359_v50 = vsel %vm358_vm2, %v357_v49, %v350_v48 }
 0x138   :  { %v354_v14 = vpop.permute.xlu1 %353 }
 0x139   :  { %v361_v51 = vsel %vm360_vm3, %v359_v50, %v354_v14 }
 0x13a   :  { %363 = vst.msk [vmem:[#allocation6] sm:$0xff] %vm362_vm4, %v361_v51 }
 0x13b   :  { %466 = shalt.err (!%p463_p6)
}
 0x13c   :  { %s467_s16 = scalar_lea.hbm %s588_s2, 128 }
 0x13d   :  { %p468_p7 = scmp.ne.s32.totalorder %s588_s2, %s467_s16  ;;  %p471_p8 = scmp.lt.u32.totalorder %s467_s16, %s588_s2 }
 0x13f   :  { %p473_p9 = pnand %p471_p8, %p468_p7 }
 0x141   :  { %476 = shalt.err (!%p473_p9)
}
 0x142   :  { %385 = dma.vmem_to_hbm [thread:$0]  %s383_s12, 128, %s588_s2, [#allocation7]  }
 0x143   :  { %479 = dma.done.wait [#allocation4], 256  }
 0x144   :  { %480 = vsyncadd [#allocation4], 4294967040 }
 0x145   :  { %481 = dma.done.wait [#allocation7], 128  }
 0x146   :  { %482 = vsyncadd [#allocation7], 4294967168 }
 0x147   :  { %392 = vsyncpa [#allocation3], 1 }
 0x148   :  { %393 = vsyncpa [#allocation4], 1 }
 0x149   :  { %394 = vsyncpa [#allocation7], 1 }

// kernel: transformer_forward.2
= control target key start
LH: loop header
LB: loop body
LE: loop exit
PB: predicated region body
PF: predicated region fallthrough
CT: control target
= control target key end

     0   :  { %s1659_s25 = smov 0   ;;  %s1852_s0 = inlined_call_operand.vmem [shape: f32[2,8,32], index: 0, kind: input, shape index: {}, may-alias: {0,13}]   ;;  %s1853_s1 = inlined_call_operand.vmem [shape: f32[1,32], index: 1, kind: input, shape index: {}]   ;;  %s1854_s2 = inlined_call_operand.vmem [shape: f32[1,32], index: 2, kind: input, shape index: {}]   ;;  %s1855_s3 = inlined_call_operand.vmem [shape: bf16[32,96], index: 3, kind: input, shape index: {}]   ;;  %s1856_s4 = inlined_call_operand.vmem [shape: f32[1,96], index: 4, kind: input, shape index: {}]   ;;  %s1857_s5 = inlined_call_operand.vmem [shape: bf16[32,32], index: 5, kind: input, shape index: {}]   ;;  %s1858_s6 = inlined_call_operand.vmem [shape: f32[1,32], index: 6, kind: input, shape index: {}]   ;;  %s1859_s7 = inlined_call_operand.vmem [shape: f32[1,32], index: 7, kind: input, shape index: {}]   ;;  %s1860_s8 = inlined_call_operand.vmem [shape: f32[1,32], index: 8, kind: input, shape index: {}]   ;;  %s1861_s9 = inlined_call_operand.vmem [shape: bf16[32,128], index: 9, kind: input, shape index: {}]   ;;  %s1862_s10 = inlined_call_operand.vmem [shape: f32[1,128], index: 10, kind: input, shape index: {}]   ;;  %s1863_s11 = inlined_call_operand.vmem [shape: bf16[128,32], index: 11, kind: input, shape index: {}]   ;;  %s1864_s12 = inlined_call_operand.vmem [shape: f32[1,32], index: 12, kind: input, shape index: {}]   ;;  %s1865_s13 = inlined_call_operand.vmem [shape: f32[2,8,32], index: 13, kind: output, shape index: {}, may-alias: {0,13}]  }
   0x1 LB: > { %s1334_s26 = sadd.s32 4294967295, %s1571_s25   ;;  %p1338_p0 = scmp.ge.s32.totalorder %s1571_s25, 1  ;;  %s1571_s25 = sphi %s1659_s25, %s23_s25  }
   0x2   : > { %p386_p1 = scmp.lt.s32.totalorder %s1571_s25, 3 }
   0x4   : > { %p387_p2 = pnand %p1338_p0, %p386_p1 }
   0x5   : > { %p428_p3 = scmp.lt.s32.totalorder (!%p387_p2), %s1334_s26, 1  ;;  %vm440_vm0 = vcmask (!%p387_p2), 261120   ;;  %v1527_v7 = vld [vmem:[%s1855_s3] sm:$0xff] (!%p387_p2)   ;;  %v1573_v8 = vmov (!%p387_p2), 0.0   ;;  %vm1574_vm1 = vmmov (!%p387_p2), 0   ;;  %v1528_v9 = vld [vmem:[%s1855_s3 + $0x8] sm:$0xff] (!%p387_p2)  }
   0x6   : > { %390 = sbr.rel (%p387_p2) target bundleno = 2430 (0x97e), region = 72  ;;  %1411 = vmatprep.subr.bf16.mxu0 (!%p387_p2), %v1573_v8  ;;  %1415 = vmatprep.mubr.msk.bf16.mxu0 (!%p387_p2), %vm1574_vm1, %v1573_v8  ;;  %v1341_v14 = vld [vmem:[%s1853_s1] ss:$0 sm:$0xff] (!%p387_p2)  ;;  %s1575_s24 = smov (!%p387_p2), 120   ;;  %vm540_vm2 = vcmask (!%p387_p2), 64512   ;;  %vm602_vm3 = vcmask (!%p387_p2), 1043456  }
   0x7   : > { %1412 = vmatpush3.bf16.msra.mxu0 (!%p387_p2), %v1527_v7  ;;  %1431 = vmatprep.subr.bf16.mxu1 (!%p387_p2), %v1573_v8  ;;  %v1342_v16 = vld [vmem:[%s1854_s2] ss:$0 sm:$0xff] (!%p387_p2)  ;;  %s1576_s28 = smov (!%p387_p2), 96   ;;  %s1577_s29 = smov (!%p387_p2), 88   ;;  %vm991_vm4 = vcmask (!%p387_p2), 130048   ;;  %vm993_vm5 = vcmask (!%p387_p2), 195584  }
   0x8   : > { %1413 = vmatprep.subr.bf16.mxu0 (!%p387_p2), %v1573_v8  ;;  %1433 = vmatprep.mubr.msk.bf16.mxu1 (!%p387_p2), %vm1574_vm1, %v1573_v8  ;;  %v1343_v20 = vld [vmem:[%s1856_s4] ss:$0 sm:$0xff] (!%p387_p2)  ;;  %s1579_s14 = smov (!%p387_p2), 112   ;;  %s1580_s15 = smov (!%p387_p2), 72  }
   0x9   : > { %s1581_s16 = smov (!%p387_p2), 104   ;;  %s1582_s17 = smov (!%p387_p2), 64  }
   0xa   : > { %s1583_s18 = smov (!%p387_p2), 56   ;;  %s1584_s19 = smov (!%p387_p2), 48  }
   0xb   : > { %1414 = vmatpush3.bf16.msra.mxu0 (!%p387_p2), %v1528_v9  ;;  %s1585_s20 = smov (!%p387_p2), 40   ;;  %s1586_s21 = smov (!%p387_p2), 8  }
   0xc   : > { %1419 = vmatprep.subr.bf16.mxu0 (!%p387_p2), %v1573_v8 }
   0xd   : > { %s1867_s26 = smov (!%p428_p3, %s1334_s26), 1 }
   0xe   : > { %s1339_s27 = sshll.u32 %s1867_s26, 3 }
   0xf   : > { %s431_s30 = scalar_lea.vmem %s1852_s0, %s1339_s27 }
  0x10   : > { %v1675_v0 = vld [vmem:[%s431_s30] sm:$0xff]  ;;  %s1578_s30 = smov 80  }
  0x11   : > { %v441_v1 = vsel %vm440_vm0, %v1675_v0, 0.0 }
  0x12   : > { %442 = vadd.xlane.f32.xlu0 %v441_v1 }
  0x9f   : > { %v443_v2 = vpop.xlane.xlu0 %442 }
  0xa0   : > { %v445_v3 = vmul.f32 0.03125, %v443_v2 }
  0xa2   : > { %v446_v4 = vsub.f32 %v1675_v0, %v445_v3 }
  0xa4   : > { %v447_v5 = vmul.f32 %v446_v4, %v446_v4 }
  0xa6   : > { %v448_v6 = vsel %vm440_vm0, %v447_v5, 0.0 }
  0xa7   : > { %449 = vadd.xlane.f32.xlu0 %v448_v6 }
 0x134   : > { %v450_v10 = vpop.xlane.xlu0 %449 }
 0x135   : > { %v451_v11 = vmul.f32 0.03125, %v450_v10 }
 0x137   : > { %v452_v12 = vadd.f32 1e-05, %v451_v11 }
 0x139   : > { %1541 = vrsqrt.f32 %v452_v12 }
 0x143   : > { %v1542_v13 = vpop.eup %1541 }
 0x144   : > { %v454_v15 = vmul.f32 %v1542_v13, %v446_v4 }
 0x146   : > { %v461_v17 = vmul.f32 %v1341_v14, %v454_v15 }
 0x148   : > { %v468_v18 = vadd.f32 %v1342_v16, %v461_v17 }
 0x14a   : > { %v469_v19 = vpack.c.bf16 %v468_v18, %v468_v18 }
 0x14c   : > { %1416 = vmatmul.mubr.msk.bf16.vlgmr.msra.gmra.mrb[0].mxu0 %vm440_vm0, %v469_v19 }
 0x14d   : > { %1421 = vmatprep.mubr.msk.bf16.mxu0 %vm1574_vm1, %v1573_v8 }
 0x21f   : > { %v530_v21 = vpop.f32.mrb[0].mxu0 }
 0x220   : > { %v531_v22 = vadd.f32 %v1343_v20, %v530_v21  ;;  %v1417_v23 = vpop.f32.mrb[1].mxu0 }
 0x221   : > { %v533_v24 = vpop.f32.mrb[2].mxu0 }
 0x222   : > { %v1707_v25 = vpack.c.bf16 %v531_v22, %v531_v22  ;;  %v1418_v26 = vpop.f32.mrb[3].mxu0 }
 0x224   : > { %648 = vrot.lane.b32.xlu0 %v1707_v25, %s1575_s24  ;;  %538 = vrot.lane.b32.xlu1 %v1707_v25, %s1576_s28 }
 0x228   : > { %650 = vrot.lane.b32.xlu1 %v1707_v25, %s1577_s29  ;;  %s1587_s29 = smov 16  }
 0x22c   : > { %760 = vrot.lane.b32.xlu1 %v1707_v25, %s1578_s30  ;;  %s1588_s30 = smov 24  }
 0x230   : > { %758 = vrot.lane.b32.xlu1 %v1707_v25, %s1579_s14 }
 0x234   : > { %870 = vrot.lane.b32.xlu1 %v1707_v25, %s1580_s15 }
 0x238   : > { %868 = vrot.lane.b32.xlu1 %v1707_v25, %s1581_s16 }
 0x296   : > { %v539_v27 = vpop.permute.xlu1 %538  ;;  %v649_v32 = vpop.permute.xlu0 %648 }
 0x297   : > { %v545_v28 = vsel %vm540_vm2, %v539_v27, 0 }
 0x298   : > { %1420 = vmatpush3.bf16.xpose.msra.mxu0 %v545_v28 }
 0x299   : > { %1425 = vmatprep.subr.bf16.mxu0 %v1573_v8 }
 0x29a   : > { %v651_v29 = vpop.permute.xlu1 %650 }
 0x29b   : > { %v656_v30 = vsel %vm540_vm2, %v651_v29, 0 }
 0x29c   : > { %1432 = vmatpush3.bf16.xpose.msra.mxu1 %v656_v30 }
 0x29d   : > { %1443 = vmatprep.subr.bf16.mxu1 %v1573_v8 }
 0x29e   : > { %v761_v31 = vpop.permute.xlu1 %760 }
 0x29f   : > { %1422 = vmatmul.mubr.msk.bf16.vlgmr.msra.gmra.mrb[4].mxu0 %vm540_vm2, %v1707_v25  ;;  %v766_v34 = vsel %vm540_vm2, %v761_v31, 0 }
 0x2a0   : > { %1427 = vmatprep.mubr.msk.bf16.mxu0 %vm1574_vm1, %v1573_v8 }
 0x2a2   : > { %v759_v33 = vpop.permute.xlu1 %758 }
 0x2a3   : > { %1434 = vmatmul.mubr.msk.bf16.vlgmr.msra.gmra.mrb[0].mxu1 %vm540_vm2, %v649_v32 }
 0x2a4   : > { %1444 = vmatpush3.bf16.xpose.msra.mxu1 %v766_v34  ;;  %1445 = vmatprep.mubr.msk.bf16.mxu1 %vm1574_vm1, %v1573_v8 }
 0x2a5   : > { %1455 = vmatprep.subr.bf16.mxu1 %v1573_v8 }
 0x2a6   : > { %v871_v35 = vpop.permute.xlu1 %870 }
 0x2a7   : > { %v876_v36 = vsel %vm540_vm2, %v871_v35, 0 }
 0x2aa   : > { %v869_v37 = vpop.permute.xlu1 %868 }
 0x2ab   : > { %1446 = vmatmul.mubr.msk.bf16.vlgmr.msra.gmra.mrb[4].mxu1 %vm540_vm2, %v759_v33 }
 0x2ac   : > { %1456 = vmatpush3.bf16.xpose.msra.mxu1 %v876_v36  ;;  %1457 = vmatprep.mubr.msk.bf16.mxu1 %vm1574_vm1, %v1573_v8 }
 0x2ad   : > { %1467 = vmatprep.subr.bf16.mxu1 %v1573_v8 }
 0x2b3   : > { %1458 = vmatmul.mubr.msk.bf16.vlgmr.msra.gmra.mrb[8].mxu1 %vm540_vm2, %v869_v37 }
 0x2b4   : > { %1471 = vmatprep.mubr.msk.bf16.mxu1 %vm1574_vm1, %v1573_v8 }
 0x372   : > { %v581_v38 = vpop.f32.mrb[4].mxu0 }
 0x373   : > { %v1423_v39 = vpop.f32.mrb[5].mxu0  ;;  %v587_v40 = vsel %vm540_vm2, %v581_v38, -inf }
 0x374   : > { %588 = vmax.xlane.f32.xlu1 %v587_v40  ;;  %v584_v41 = vpop.f32.mrb[6].mxu0  ;;  %v1529_v40 = vld [vmem:[%s1857_s5] sm:$0xff]  }
 0x375   : > { %v1424_v42 = vpop.f32.mrb[7].mxu0  ;;  %1468 = vmatpush3.bf16.msra.mxu1 %v1529_v40 }
 0x376   : > { %v692_v43 = vpop.f32.mrb[0].mxu1  ;;  %1469 = vmatprep.subr.bf16.mxu1 %v1573_v8  ;;  %v1530_v42 = vld [vmem:[%s1857_s5 + $0x8] sm:$0xff]  }
 0x377   : > { %v1435_v44 = vpop.f32.mrb[1].mxu1  ;;  %v698_v45 = vsel %vm540_vm2, %v692_v43, -inf }
 0x378   : > { %699 = vmax.xlane.f32.xlu0 %v698_v45  ;;  %v695_v46 = vpop.f32.mrb[2].mxu1 }
 0x379   : > { %v1436_v47 = vpop.f32.mrb[3].mxu1  ;;  %1470 = vmatpush3.bf16.msra.mxu1 %v1530_v42 }
 0x37a   : > { %1483 = vmatprep.subr.bf16.mxu1 %v1573_v8 }
 0x37e   : > { %v802_v48 = vpop.f32.mrb[4].mxu1 }
 0x37f   : > { %v1447_v49 = vpop.f32.mrb[5].mxu1  ;;  %v808_v57 = vsel %vm540_vm2, %v802_v48, -inf }
 0x380   : > { %v805_v50 = vpop.f32.mrb[6].mxu1 }
 0x381   : > { %v1448_v51 = vpop.f32.mrb[7].mxu1 }
 0x385   : > { %597 = vrot.lane.b32.xlu1 %v1707_v25, %s1582_s17 }
 0x386   : > { %v912_v52 = vpop.f32.mrb[8].mxu1 }
 0x387   : > { %v1459_v53 = vpop.f32.mrb[9].mxu1  ;;  %v918_v54 = vsel %vm540_vm2, %v912_v52, -inf }
 0x388   : > { %919 = vmax.xlane.f32.xlu0 %v918_v54  ;;  %v915_v55 = vpop.f32.mrb[10].mxu1 }
 0x389   : > { %v1460_v56 = vpop.f32.mrb[11].mxu1 }
 0x39e   : > { %708 = vrot.lane.b32.xlu0 %v1707_v25, %s1583_s18  ;;  %s435_s18 = scalar_lea.vmem %s1865_s13, %s1339_s27 }
 0x3a9   : > { %809 = vmax.xlane.f32.xlu1 %v808_v57 }
 0x3ba   : > { %818 = vrot.lane.b32.xlu1 %v1707_v25, %s1584_s19 }
 0x3be   : > { %928 = vrot.lane.b32.xlu1 %v1707_v25, %s1585_s20 }
 0x401   : > { %v589_v58 = vpop.xlane.xlu1 %588 }
 0x402   : > { %v590_v59 = vsub.f32 %v581_v38, %v589_v58 }
 0x404   : > { %v591_v60 = vmul.f32 1.442695, %v590_v59 }
 0x405   : > { %v700_v61 = vpop.xlane.xlu0 %699  ;;  %v598_v62 = vpop.permute.xlu1 %597 }
 0x406   : > { %1543 = vpow2.f32 %v591_v60  ;;  %v701_v63 = vsub.f32 %v692_v43, %v700_v61  ;;  %v604_v1 = vsel %vm602_vm3, %v598_v62, 0 }
 0x407   : > { %1426 = vmatpush3.bf16.msra.mxu0 %v604_v1 }
 0x408   : > { %v702_v2 = vmul.f32 1.442695, %v701_v63  ;;  %1437 = vmatprep.subr.bf16.mxu0 %v1573_v8 }
 0x40a   : > { %1545 = vpow2.f32 %v702_v2  ;;  %v1355_v2 = vld [vmem:[%s1858_s6] ss:$0 sm:$0xff] }
 0x410   : > { %v1544_v3 = vpop.eup %1543 }
 0x411   : > { %v596_v4 = vpack.c.bf16 %v1544_v3, %v1544_v3  ;;  %v593_v16 = vsel %vm540_vm2, %v1544_v3, 0.0 }
 0x413   : > { %1428 = vmatmul.mubr.msk.bf16.vlgmr.msra.gmra.mrb[8].mxu0 %vm540_vm2, %v596_v4 }
 0x414   : > { %v1546_v5 = vpop.eup %1545  ;;  %1439 = vmatprep.mubr.msk.bf16.mxu0 %vm1574_vm1, %v1573_v8 }
 0x415   : > { %v920_v6 = vpop.xlane.xlu0 %919  ;;  %v704_v7 = vsel %vm540_vm2, %v1546_v5, 0.0  ;;  %v707_v13 = vpack.c.bf16 %v1546_v5, %v1546_v5 }
 0x416   : > { %v921_v9 = vsub.f32 %v912_v52, %v920_v6  ;;  %705 = vadd.xlane.f32.xlu0 %v704_v7 }
 0x418   : > { %v922_v10 = vmul.f32 1.442695, %v921_v9 }
 0x419   : > { %v709_v11 = vpop.permute.xlu0 %708 }
 0x41a   : > { %1547 = vpow2.f32 %v922_v10  ;;  %v714_v12 = vsel %vm602_vm3, %v709_v11, 0 }
 0x41b   : > { %1438 = vmatpush3.bf16.msra.mxu0 %v714_v12 }
 0x41c   : > { %1449 = vmatprep.subr.bf16.mxu0 %v1573_v8 }
 0x41e   : > { %1440 = vmatmul.mubr.msk.bf16.vlgmr.msra.gmra.mrb[12].mxu0 %vm540_vm2, %v707_v13 }
 0x41f   : > { %1451 = vmatprep.mubr.msk.bf16.mxu0 %vm1574_vm1, %v1573_v8 }
 0x424   : > { %v1548_v14 = vpop.eup %1547 }
 0x425   : > { %v924_v15 = vsel %vm540_vm2, %v1548_v14, 0.0  ;;  %v927_v27 = vpack.c.bf16 %v1548_v14, %v1548_v14 }
 0x426   : > { %925 = vadd.xlane.f32.xlu0 %v924_v15 }
 0x42a   : > { %594 = vadd.xlane.f32.xlu0 %v593_v16  ;;  %v1531_v16 = vld [vmem:[%s1861_s9] sm:$0xff]  }
 0x436   : > { %v810_v17 = vpop.xlane.xlu1 %809 }
 0x437   : > { %v811_v18 = vsub.f32 %v802_v48, %v810_v17 }
 0x439   : > { %v812_v19 = vmul.f32 1.442695, %v811_v18 }
 0x43a   : > { %v819_v20 = vpop.permute.xlu1 %818 }
 0x43b   : > { %1549 = vpow2.f32 %v812_v19  ;;  %v824_v21 = vsel %vm602_vm3, %v819_v20, 0 }
 0x43c   : > { %1450 = vmatpush3.bf16.msra.mxu0 %v824_v21  ;;  %v1359_v21 = vld [vmem:[%s1859_s7] ss:$0 sm:$0xff] }
 0x43d   : > { %1461 = vmatprep.subr.bf16.mxu0 %v1573_v8 }
 0x43e   : > { %v929_v23 = vpop.permute.xlu1 %928 }
 0x43f   : > { %v934_v26 = vsel %vm602_vm3, %v929_v23, 0  ;;  %v1360_v23 = vld [vmem:[%s1860_s8] ss:$0 sm:$0xff] }
 0x445   : > { %v1550_v22 = vpop.eup %1549 }
 0x446   : > { %v814_v24 = vsel %vm540_vm2, %v1550_v22, 0.0  ;;  %v817_v25 = vpack.c.bf16 %v1550_v22, %v1550_v22 }
 0x447   : > { %815 = vadd.xlane.f32.xlu1 %v814_v24 }
 0x448   : > { %1452 = vmatmul.mubr.msk.bf16.vlgmr.msra.gmra.mrb[16].mxu0 %vm540_vm2, %v817_v25 }
 0x449   : > { %1462 = vmatpush3.bf16.msra.mxu0 %v934_v26  ;;  %1463 = vmatprep.mubr.msk.bf16.mxu0 %vm1574_vm1, %v1573_v8 }
 0x44a   : > { %1475 = vmatprep.subr.bf16.mxu0 %v1573_v8 }
 0x450   : > { %1464 = vmatmul.mubr.msk.bf16.vlgmr.msra.gmra.mrb[20].mxu0 %vm540_vm2, %v927_v27  ;;  %v1533_v27 = vld [vmem:[%s1863_s11] sm:$0xff]  }
 0x451   : > { %1479 = vmatprep.mubr.msk.bf16.mxu0 %vm1574_vm1, %v1573_v8  ;;  %1476 = vmatpush3.bf16.msra.mxu0 %v1531_v16 }
 0x452   : > { %1477 = vmatprep.subr.bf16.mxu0 %v1573_v8 }
 0x4a3   : > { %v706_v28 = vpop.xlane.xlu0 %705 }
 0x4a4   : > { %1551 = vrcp.f32 %v706_v28  ;;  %v1534_v28 = vld [vmem:[%s1863_s11 + $0x8] sm:$0xff]  }
 0x4ae   : > { %v1552_v33 = vpop.eup %1551 }
 0x4b3   : > { %v926_v41 = vpop.xlane.xlu0 %925 }
 0x4b7   : > { %v595_v55 = vpop.xlane.xlu0 %594 }
 0x4d4   : > { %v816_v39 = vpop.xlane.xlu1 %815 }
 0x4d5   : > { %1553 = vrcp.f32 %v816_v39 }
 0x4d6   : > { %1555 = vrcp.f32 %v926_v41 }
 0x4d7   : > { %1557 = vrcp.f32 %v595_v55 }
 0x4df   : > { %v1554_v43 = vpop.eup %1553 }
 0x4e0   : > { %v1556_v49 = vpop.eup %1555 }
 0x4e1   : > { %v1558_v56 = vpop.eup %1557 }
 0x4e6   : > { %v640_v29 = vpop.f32.mrb[8].mxu0 }
 0x4e7   : > { %v1429_v30 = vpop.f32.mrb[9].mxu0  ;;  %v647_v58 = vmul.f32 %v1558_v56, %v640_v29  ;;  %v1535_v29 = vld [vmem:[%s1863_s11 + $0x10] sm:$0xff]  }
 0x4e8   : > { %v643_v31 = vpop.f32.mrb[10].mxu0  ;;  %v1536_v30 = vld [vmem:[%s1863_s11 + $0x18] sm:$0xff]  }
 0x4e9   : > { %v1430_v32 = vpop.f32.mrb[11].mxu0  ;;  %v1537_v31 = vld [vmem:[%s1863_s11 + $0x20] sm:$0xff]  }
 0x4ea   : > { %v1538_v32 = vld [vmem:[%s1863_s11 + $0x28] sm:$0xff]  }
 0x4f1   : > { %v750_v34 = vpop.f32.mrb[12].mxu0 }
 0x4f2   : > { %v757_v35 = vmul.f32 %v1552_v33, %v750_v34  ;;  %v1441_v36 = vpop.f32.mrb[13].mxu0  ;;  %v1539_v33 = vld [vmem:[%s1863_s11 + $0x30] sm:$0xff]   ;;  %v1540_v34 = vld [vmem:[%s1863_s11 + $0x38] sm:$0xff]  }
 0x4f3   : > { %v753_v37 = vpop.f32.mrb[14].mxu0 }
 0x4f4   : > { %979 = vrot.lane.b32.xlu1 %v757_v35, %s1586_s21  ;;  %v1442_v38 = vpop.f32.mrb[15].mxu0  ;;  %v1361_v35 = vld [vmem:[%s1862_s10] ss:$0 sm:$0xff] }
 0x51b   : > { %v860_v44 = vpop.f32.mrb[16].mxu0 }
 0x51c   : > { %v867_v45 = vmul.f32 %v1554_v43, %v860_v44  ;;  %v1453_v46 = vpop.f32.mrb[17].mxu0 }
 0x51d   : > { %v863_v47 = vpop.f32.mrb[18].mxu0 }
 0x51e   : > { %983 = vrot.lane.b32.xlu0 %v867_v45, %s1587_s29  ;;  %v1454_v48 = vpop.f32.mrb[19].mxu0  ;;  %v1366_v47 = vld [vmem:[%s1864_s12] ss:$0 sm:$0xff] }
 0x523   : > { %v970_v50 = vpop.f32.mrb[20].mxu0 }
 0x524   : > { %v977_v51 = vmul.f32 %v1556_v49, %v970_v50  ;;  %v1465_v52 = vpop.f32.mrb[21].mxu0 }
 0x525   : > { %v973_v53 = vpop.f32.mrb[22].mxu0 }
 0x526   : > { %987 = vrot.lane.b32.xlu1 %v977_v51, %s1588_s30  ;;  %v1466_v54 = vpop.f32.mrb[23].mxu0 }
 0x566   : > { %v980_v57 = vpop.permute.xlu1 %979 }
 0x567   : > { %v990_v60 = vsel %vm540_vm2, %v647_v58, %v980_v57 }
 0x590   : > { %v984_v59 = vpop.permute.xlu0 %983 }
 0x591   : > { %v992_v61 = vsel %vm991_vm4, %v990_v60, %v984_v59 }
 0x598   : > { %v988_v62 = vpop.permute.xlu1 %987 }
 0x599   : > { %v994_v63 = vsel %vm993_vm5, %v992_v61, %v988_v62 }
 0x59a   : > { %v995_v1 = vpack.c.bf16 %v994_v63, %v994_v63 }
 0x59c   : > { %1472 = vmatmul.mubr.msk.bf16.vlgmr.msra.gmra.mrb[12].mxu1 %vm440_vm0, %v995_v1 }
 0x59d   : > { %1499 = vmatprep.mubr.msk.bf16.mxu1 %vm1574_vm1, %v1573_v8  ;;  %1484 = vmatpush3.bf16.msra.mxu1 %v1533_v27 }
 0x59e   : > { %1485 = vmatprep.subr.bf16.mxu1 %v1573_v8 }
 0x5a1   : > { %1486 = vmatpush3.bf16.msra.mxu1 %v1534_v28 }
 0x5a2   : > { %1487 = vmatprep.subr.bf16.mxu1 %v1573_v8 }
 0x5a5   : > { %1488 = vmatpush3.bf16.msra.mxu1 %v1535_v29 }
 0x5a6   : > { %1489 = vmatprep.subr.bf16.mxu1 %v1573_v8 }
 0x5a9   : > { %1490 = vmatpush3.bf16.msra.mxu1 %v1536_v30 }
 0x5aa   : > { %1491 = vmatprep.subr.bf16.mxu1 %v1573_v8 }
 0x5ad   : > { %1492 = vmatpush3.bf16.msra.mxu1 %v1537_v31 }
 0x5ae   : > { %1493 = vmatprep.subr.bf16.mxu1 %v1573_v8 }
 0x5b1   : > { %1494 = vmatpush3.bf16.msra.mxu1 %v1538_v32 }
 0x5b2   : > { %1495 = vmatprep.subr.bf16.mxu1 %v1573_v8 }
 0x5b5   : > { %1496 = vmatpush3.bf16.msra.mxu1 %v1539_v33 }
 0x5b6   : > { %1497 = vmatprep.subr.bf16.mxu1 %v1573_v8 }
 0x5b9   : > { %1498 = vmatpush3.bf16.msra.mxu1 %v1540_v34 }
 0x66f   : > { %v1056_v3 = vpop.f32.mrb[12].mxu1 }
 0x670   : > { %v1057_v4 = vadd.f32 %v1355_v2, %v1056_v3  ;;  %v1473_v5 = vpop.f32.mrb[13].mxu1 }
 0x671   : > { %v1059_v6 = vpop.f32.mrb[14].mxu1 }
 0x672   : > { %v1785_v7 = vadd.f32 %v1057_v4, %v1675_v0  ;;  %v1474_v9 = vpop.f32.mrb[15].mxu1  ;;  %v1532_v0 = vld [vmem:[%s1861_s9 + $0x8] sm:$0xff]  }
 0x673   : > { %1478 = vmatpush3.bf16.msra.mxu0 %v1532_v0 }
 0x674   : > { %v1065_v10 = vsel %vm440_vm0, %v1785_v7, 0.0 }
 0x675   : > { %1066 = vadd.xlane.f32.xlu1 %v1065_v10 }
 0x702   : > { %v1067_v11 = vpop.xlane.xlu1 %1066 }
 0x703   : > { %v1068_v12 = vmul.f32 0.03125, %v1067_v11 }
 0x705   : > { %v1069_v13 = vsub.f32 %v1785_v7, %v1068_v12 }
 0x707   : > { %v1070_v14 = vmul.f32 %v1069_v13, %v1069_v13 }
 0x709   : > { %v1071_v15 = vsel %vm440_vm0, %v1070_v14, 0.0 }
 0x70a   : > { %1072 = vadd.xlane.f32.xlu0 %v1071_v15 }
 0x797   : > { %v1073_v17 = vpop.xlane.xlu0 %1072 }
 0x798   : > { %v1074_v18 = vmul.f32 0.03125, %v1073_v17 }
 0x79a   : > { %v1075_v19 = vadd.f32 1e-05, %v1074_v18 }
 0x79c   : > { %1559 = vrsqrt.f32 %v1075_v19 }
 0x7a6   : > { %v1560_v20 = vpop.eup %1559 }
 0x7a7   : > { %v1077_v22 = vmul.f32 %v1560_v20, %v1069_v13 }
 0x7a9   : > { %v1084_v24 = vmul.f32 %v1359_v21, %v1077_v22 }
 0x7ab   : > { %v1091_v25 = vadd.f32 %v1360_v23, %v1084_v24 }
 0x7ad   : > { %v1092_v26 = vpack.c.bf16 %v1091_v25, %v1091_v25 }
 0x7af   : > { %1480 = vmatmul.mubr.msk.bf16.vlgmr.msra.gmra.mrb[24].mxu0 %vm440_vm0, %v1092_v26 }
 0x882   : > { %v1153_v36 = vpop.f32.mrb[24].mxu0 }
 0x883   : > { %v1154_v37 = vadd.f32 %v1361_v35, %v1153_v36  ;;  %v1481_v38 = vpop.f32.mrb[25].mxu0 }
 0x884   : > { %v1156_v39 = vpop.f32.mrb[26].mxu0 }
 0x885   : > { %v1365_v40 = vmul.f32 -1.702, %v1154_v37  ;;  %v1482_v41 = vpop.f32.mrb[27].mxu0 }
 0x887   : > { %v1161_v42 = vmul.f32 1.442695, %v1365_v40 }
 0x889   : > { %1561 = vpow2.f32 %v1161_v42 }
 0x893   : > { %v1562_v43 = vpop.eup %1561 }
 0x894   : > { %v1163_v8 = vadd.f32 1.0, %v1562_v43 }
 0x896   : > { %1563 = vrcp.f32 %v1163_v8 }
 0x8a0   : > { %v1564_v44 = vpop.eup %1563 }
 0x8a1   : > { %v1166_v45 = vmul.f32 %v1564_v44, %v1154_v37 }
 0x8a3   : > { %v1167_v46 = vpack.c.bf16 %v1166_v45, %v1166_v45 }
 0x8a5   : > { %1500 = vmatmul.mubr.bf16.vlgmr.msra.gmra.mrb[16].mxu1 %v1167_v46 }
 0x978   : > { %v1273_v48 = vpop.f32.mrb[16].mxu1 }
 0x979   : > { %v1274_v49 = vadd.f32 %v1366_v47, %v1273_v48  ;;  %v1501_v50 = vpop.f32.mrb[17].mxu1 }
 0x97a   : > { %v1276_v51 = vpop.f32.mrb[18].mxu1 }
 0x97b   : > { %v1279_v52 = vadd.f32 %v1274_v49, %v1785_v7  ;;  %v1502_v53 = vpop.f32.mrb[19].mxu1 }
 0x97d   : > { %1280 = vst.msk [vmem:[%s435_s18] sm:$0xff] %vm440_vm0, %v1279_v52 }
 0x97e PF: > { %s23_s25 = sadd.s32 1, %s1571_s25  }
 0x97f   : > { %p20_p4 = scmp.ge.s32.totalorder %s23_s25, 4  }
 0x981   :  { %22 = sbr.rel (!%p20_p4) target bundleno = 1 (0x1), region = 102 }

</bundles_post_ra>
